<compile_context>
chip_gen: v5e
topology: v5e:2x2
jax: 0.10.0
libtpu: 0.0.40
codegen_flags: <defaults>
</compile_context>

<pallas_src>
import functools
import math

import jax
import jax.numpy as jnp
from jax.experimental import pallas as pl
from jax.experimental.pallas import tpu as pltpu


def _enc_self_attn_kernel(x_ref, wqkv_ref, bqkv_ref, wo_ref, bo_ref,
                          gamma_ref, beta_ref, out_ref, *,
                          num_heads: int, nb: int, matmul_dtype):
    """One grid step handles `nb` batch elements.

    x_ref / out_ref: (S, nb*E)  -- local batch j lives in lanes [j*E, (j+1)*E)
    wqkv_ref: (E, 3E) fused [Wq*scale | Wk | Wv]   (matmul dtype)
    bqkv_ref: (1, 3E) fused biases (Q third pre-scaled, f32)
    wo_ref:   (E, E)  out-projection weight        (matmul dtype)
    bo_ref / gamma_ref / beta_ref: (1, E) f32
    """
    S = x_ref.shape[0]
    E = wo_ref.shape[0]
    Dh = E // num_heads

    w_qkv = wqkv_ref[...].astype(matmul_dtype)
    b_qkv = bqkv_ref[...].astype(jnp.float32)
    w_o = wo_ref[...].astype(matmul_dtype)
    b_o = bo_ref[...].astype(jnp.float32)
    gamma = gamma_ref[...].astype(jnp.float32)
    beta = beta_ref[...].astype(jnp.float32)

    x_blk = x_ref[...].astype(jnp.float32)                      # (S, nb*E)

    # Flatten local batches into token rows (batch-major) so all per-token ops below
    # are single dense matrix ops and per-batch views are static sublane slices.
    x_rows = jnp.concatenate(
        [x_blk[:, j * E:(j + 1) * E] for j in range(nb)], axis=0)        # (nb*S, E)

    # One fused QKV projection for every token in this block (one wide MXU matmul;
    # the 1/sqrt(Dh) query scale is pre-folded into the Q third of w_qkv / b_qkv).
    qkv = jnp.dot(x_rows.astype(matmul_dtype), w_qkv,
                  preferred_element_type=jnp.float32) + b_qkv            # (nb*S, 3E)

    nt_dims = (((1,), (1,)), ((), ()))              # NT contraction (no k transpose)

    o_rows_parts = []
    for j in range(nb):                             # static local-batch loop
        qkv_j = qkv[j * S:(j + 1) * S, :]           # (S, 3E), static sublane slice
        head_outs = []
        for h in range(num_heads):                  # static head loop
            lo = h * Dh
            q_h = qkv_j[:, lo:lo + Dh]                         # (S, Dh), pre-scaled
            k_h = qkv_j[:, E + lo:E + lo + Dh]                 # (S, Dh)
            v_h = qkv_j[:, 2 * E + lo:2 * E + lo + Dh]         # (S, Dh)

            s = jax.lax.dot_general(
                q_h.astype(matmul_dtype), k_h.astype(matmul_dtype),
                dimension_numbers=nt_dims,
                preferred_element_type=jnp.float32)            # (S, S)

            m = jnp.max(s, axis=-1, keepdims=True)
            p = jnp.exp(s - m)                                 # unnormalized probs
            denom = jnp.sum(p, axis=-1, keepdims=True)         # (S, 1)

            o_h = jnp.dot(p.astype(matmul_dtype), v_h.astype(matmul_dtype),
                          preferred_element_type=jnp.float32)  # (S, Dh)
            # Deferred softmax normalization on the small head output; the approximate
            # reciprocal runs on the otherwise idle EUP slot.
            head_outs.append(o_h * pl.reciprocal(denom, approx=True))
        # Lane-concat heads -> (S, E) so the out-projection is ONE K=E matmul.
        o_rows_parts.append(jnp.concatenate(head_outs, axis=-1))
    o_rows = jnp.concatenate(o_rows_parts, axis=0)                       # (nb*S, E)

    # Single dense out-projection + bias + residual for the whole token block.
    y = jnp.dot(o_rows.astype(matmul_dtype), w_o,
                preferred_element_type=jnp.float32) + b_o + x_rows       # (nb*S, E)

    # LayerNorm over the embedding dim (eps = 1e-5, PyTorch default), f32 math.
    mean = jnp.mean(y, axis=-1, keepdims=True)
    centered = y - mean
    var = jnp.mean(centered * centered, axis=-1, keepdims=True)
    y = centered * jax.lax.rsqrt(var + 1e-5) * gamma + beta

    # Re-pack token rows into the (S, nb*E) lane-blocked layout; one dense 2-D store.
    out_blk = jnp.concatenate([y[j * S:(j + 1) * S, :] for j in range(nb)], axis=-1)
    out_ref[...] = out_blk.astype(out_ref.dtype)


def _tensorcores_per_chip() -> int:
    """2 for chips whose cores are fed by 'parallel' grid axes (v7x / megacore)."""
    try:
        kind = jax.devices()[0].device_kind.lower()
    except Exception:
        return 1
    return 2 if any(t in kind for t in ("v7", "7x", "v4", "v5p")) else 1


def _pick_batch_tiles(batch: int, embed: int, num_tc: int) -> int:
    """Parallel batch tiles only help with >1 TensorCore, and each block's lane width
    (nb*E) must stay a multiple of 128 (or the full B*E) so blocks remain tile-aligned
    and the output store stays dense."""
    if num_tc >= 2 and batch % num_tc == 0:
        nb = batch // num_tc
        if (nb * embed) % 128 == 0:
            return num_tc
    return 1


def enc_self_attention(enc_inputs, fused_params, num_heads: int, *,
                       matmul_dtype=jnp.bfloat16):
    """Forward pass of EncSelfAttension.

    enc_inputs: (S, B, E) seq-first (the module's 3-D path) or the module's 4-D path
                (d0, d1, S, E).
    fused_params: output of prepare_params() (fused, Q-scaled, matmul-dtype weights).
    matmul_dtype: jnp.bfloat16 (default, MXU-native on v5e/v6e/v7x; f32 accumulation,
                  softmax and LayerNorm) or jnp.float32 for exact parity.
    """
    orig_shape = enc_inputs.shape
    if enc_inputs.ndim == 4:
        # Module's 4-D path: (d0, d1, S, E) -> (S, d0*d1, E) (semantic permute).
        d0, d1, S4, E4 = orig_shape
        x3 = jnp.transpose(enc_inputs.reshape(d0 * d1, S4, E4), (1, 0, 2))
    else:
        x3 = enc_inputs

    S, B, E = x3.shape
    w_qkv, b_qkv, wo, bo, gamma, beta = fused_params

    num_tiles = _pick_batch_tiles(B, E, _tensorcores_per_chip())
    nb = B // num_tiles

    # Free metadata reshape: batch b occupies lanes [b*E, (b+1)*E).
    x2 = x3.reshape(S, B * E)

    kernel = functools.partial(_enc_self_attn_kernel, num_heads=num_heads,
                               nb=nb, matmul_dtype=matmul_dtype)

    const = lambda shape: pl.BlockSpec(shape, lambda i: (0, 0))   # fetched once
    blk = pl.BlockSpec((S, nb * E), lambda i: (0, i))

    out2 = pl.pallas_call(
        kernel,
        out_shape=jax.ShapeDtypeStruct((S, B * E), x3.dtype),
        grid_spec=pltpu.PrefetchScalarGridSpec(
            num_scalar_prefetch=0,
            grid=(num_tiles,),
            in_specs=[
                blk,                         # x (lane-blocked batches)
                const((E, 3 * E)),           # fused, Q-scaled W_qkv (matmul dtype)
                const((1, 3 * E)),           # fused, Q-scaled b_qkv (f32)
                const((E, E)),               # Wo (matmul dtype)
                const((1, E)),               # bo
                const((1, E)),               # gamma
                const((1, E)),               # beta
            ],
            out_specs=blk,
        ),
        compiler_params=pltpu.CompilerParams(
            dimension_semantics=("parallel",),
            vmem_limit_bytes=32 * 1024 * 1024),
    )(x2, w_qkv, b_qkv, wo, bo, gamma, beta)

    out3 = out2.reshape(S, B, E)
    if enc_inputs.ndim == 4:
        return jnp.transpose(out3, (1, 0, 2)).reshape(orig_shape)
    return out3


def init_params(key, embed_dim: int):
    """Synthetic parameters in x @ W ("math") layout matching nn.MultiheadAttention +
    LayerNorm shapes.  Real PyTorch checkpoints store weights for x @ W^T and must be
    transposed when loaded."""
    keys = jax.random.split(key, 8)
    scale = 1.0 / math.sqrt(embed_dim)
    wq = jax.random.normal(keys[0], (embed_dim, embed_dim), jnp.float32) * scale
    wk = jax.random.normal(keys[1], (embed_dim, embed_dim), jnp.float32) * scale
    wv = jax.random.normal(keys[2], (embed_dim, embed_dim), jnp.float32) * scale
    bq = jax.random.normal(keys[3], (1, embed_dim), jnp.float32) * 0.02
    bk = jax.random.normal(keys[4], (1, embed_dim), jnp.float32) * 0.02
    bv = jax.random.normal(keys[5], (1, embed_dim), jnp.float32) * 0.02
    wo = jax.random.normal(keys[6], (embed_dim, embed_dim), jnp.float32) * scale
    bo = jax.random.normal(keys[7], (1, embed_dim), jnp.float32) * 0.02
    gamma = jnp.ones((1, embed_dim), jnp.float32)
    beta = jnp.zeros((1, embed_dim), jnp.float32)
    return (wq, wk, wv, bq, bk, bv, wo, bo, gamma, beta)


def prepare_params(params, num_heads: int, matmul_dtype=jnp.bfloat16):
    """One-time transform: fuse Wq/Wk/Wv (+biases) into a single (E, 3E) weight, fold
    the 1/sqrt(Dh) query scale into its Q third, and store the matmul weights in HBM
    in the MXU input dtype (bf16 halves weight DMA/VMEM).  Biases / LN params stay f32."""
    wq, wk, wv, bq, bk, bv, wo, bo, gamma, beta = params
    embed_dim = wq.shape[0]
    q_scale = 1.0 / math.sqrt(embed_dim // num_heads)
    w_qkv = jnp.concatenate([wq * q_scale, wk, wv], axis=1).astype(matmul_dtype)
    b_qkv = jnp.concatenate([bq * q_scale, bk, bv], axis=1).astype(jnp.float32)
    return (w_qkv, b_qkv, wo.astype(matmul_dtype), bo.astype(jnp.float32),
            gamma.astype(jnp.float32), beta.astype(jnp.float32))


def reference(enc_inputs, params, num_heads: int):
    """Pure-JAX f32 reference of the module forward (un-fused params, explicit scale)."""
    wq, wk, wv, bq, bk, bv, wo, bo, gamma, beta = params
    S, B, E = enc_inputs.shape
    Dh = E // num_heads
    x = enc_inputs.astype(jnp.float32)
    q = x @ wq + bq
    k = x @ wk + bk
    v = x @ wv + bv

    def split(t):                                              # (S,B,E) -> (B,H,S,Dh)
        return jnp.transpose(t.reshape(S, B, num_heads, Dh), (1, 2, 0, 3))

    qh = split(q) * (1.0 / math.sqrt(Dh))
    kh = split(k)
    vh = split(v)
    s = jnp.einsum('bhqd,bhkd->bhqk', qh, kh)
    p = jax.nn.softmax(s, axis=-1)
    o = jnp.einsum('bhqk,bhkd->bhqd', p, vh)
    o = jnp.transpose(o, (2, 0, 1, 3)).reshape(S, B, E)
    y = o @ wo + bo + x
    mean = jnp.mean(y, axis=-1, keepdims=True)
    var = jnp.mean((y - mean) ** 2, axis=-1, keepdims=True)
    y = (y - mean) / jnp.sqrt(var + 1e-5) * gamma + beta
    return y.astype(enc_inputs.dtype)


if __name__ == "__main__":
    SEQ = 16       # encode_size^2 (4x4)
    BATCH = 2
    EMBED = 32
    HEADS = 4

    key = jax.random.PRNGKey(0)
    k_x, k_p = jax.random.split(key)
    enc_inputs = jax.random.normal(k_x, (SEQ, BATCH, EMBED), jnp.float32)
    params = init_params(k_p, EMBED)
    ref = reference(enc_inputs, params, HEADS)

    # 1) Exact-dtype path (f32 MXU inputs): tight parity with the PyTorch math.
    out_f32 = enc_self_attention(
        enc_inputs, prepare_params(params, HEADS, jnp.float32), HEADS,
        matmul_dtype=jnp.float32)
    out_f32 = jax.block_until_ready(out_f32)
    assert out_f32.shape == enc_inputs.shape
    err_f32 = float(jnp.max(jnp.abs(out_f32 - ref)))
    assert jnp.allclose(out_f32, ref, atol=5e-3, rtol=5e-3), err_f32

    # 2) Default fast path: bf16 MXU inputs (f32 accumulation / softmax / LayerNorm).
    #    Tolerance widened vs the f32 reference per the bf16 numerics trade-off.
    out_bf16 = enc_self_attention(
        enc_inputs, prepare_params(params, HEADS, jnp.bfloat16), HEADS,
        matmul_dtype=jnp.bfloat16)
    out_bf16 = jax.block_until_ready(out_bf16)
    assert out_bf16.shape == enc_inputs.shape
    err_bf16 = float(jnp.max(jnp.abs(out_bf16 - ref)))
    assert jnp.allclose(out_bf16, ref, atol=1e-1, rtol=1e-1), err_bf16

    print("KERNEL_OK")
</pallas_src>

<mosaic_0001>
module attributes {stable_mosaic.version = 11 : i64} {
  func.func @_enc_self_attn_kernel(%arg0: i32, %arg1: memref<16x64xf32, #tpu.memory_space<vmem>>, %arg2: memref<32x96xf32, #tpu.memory_space<vmem>>, %arg3: memref<1x96xf32, #tpu.memory_space<vmem>>, %arg4: memref<32x32xf32, #tpu.memory_space<vmem>>, %arg5: memref<1x32xf32, #tpu.memory_space<vmem>>, %arg6: memref<1x32xf32, #tpu.memory_space<vmem>>, %arg7: memref<1x32xf32, #tpu.memory_space<vmem>>, %arg8: memref<16x64xf32, #tpu.memory_space<vmem>>) attributes {dimension_semantics = [#tpu.dimension_semantics<parallel>], iteration_bounds = array<i64: 1>, scalar_prefetch = 0 : i64, scratch_operands = 0 : i64, tpu.core_type = #tpu.core_type<tc>, window_params = [{transform_indices = @transform_0, window_bounds = array<i64: 16, 64>}, {pipeline_mode = #tpu.pipeline_mode<synchronous>, transform_indices = @transform_1, window_bounds = array<i64: 32, 96>}, {pipeline_mode = #tpu.pipeline_mode<synchronous>, transform_indices = @transform_2, window_bounds = array<i64: 1, 96>}, {pipeline_mode = #tpu.pipeline_mode<synchronous>, transform_indices = @transform_3, window_bounds = array<i64: 32, 32>}, {pipeline_mode = #tpu.pipeline_mode<synchronous>, transform_indices = @transform_4, window_bounds = array<i64: 1, 32>}, {pipeline_mode = #tpu.pipeline_mode<synchronous>, transform_indices = @transform_5, window_bounds = array<i64: 1, 32>}, {pipeline_mode = #tpu.pipeline_mode<synchronous>, transform_indices = @transform_6, window_bounds = array<i64: 1, 32>}, {transform_indices = @transform_7, window_bounds = array<i64: 16, 64>}]} {
    %c0 = arith.constant 0 : index
    %c0_0 = arith.constant 0 : index
    %0 = vector.load %arg2[%c0, %c0_0] : memref<32x96xf32, #tpu.memory_space<vmem>>, vector<32x96xf32>
    %c0_1 = arith.constant 0 : index
    %c0_2 = arith.constant 0 : index
    %1 = vector.load %arg3[%c0_1, %c0_2] : memref<1x96xf32, #tpu.memory_space<vmem>>, vector<1x96xf32>
    %c0_3 = arith.constant 0 : index
    %c0_4 = arith.constant 0 : index
    %2 = vector.load %arg4[%c0_3, %c0_4] : memref<32x32xf32, #tpu.memory_space<vmem>>, vector<32x32xf32>
    %c0_5 = arith.constant 0 : index
    %c0_6 = arith.constant 0 : index
    %3 = vector.load %arg5[%c0_5, %c0_6] : memref<1x32xf32, #tpu.memory_space<vmem>>, vector<1x32xf32>
    %c0_7 = arith.constant 0 : index
    %c0_8 = arith.constant 0 : index
    %4 = vector.load %arg6[%c0_7, %c0_8] : memref<1x32xf32, #tpu.memory_space<vmem>>, vector<1x32xf32>
    %c0_9 = arith.constant 0 : index
    %c0_10 = arith.constant 0 : index
    %5 = vector.load %arg7[%c0_9, %c0_10] : memref<1x32xf32, #tpu.memory_space<vmem>>, vector<1x32xf32>
    %c0_11 = arith.constant 0 : index
    %c0_12 = arith.constant 0 : index
    %6 = vector.load %arg1[%c0_11, %c0_12] : memref<16x64xf32, #tpu.memory_space<vmem>>, vector<16x64xf32>
    %7 = vector.extract_strided_slice %6 {offsets = [0, 0], sizes = [16, 32], strides = [1, 1]} : vector<16x64xf32> to vector<16x32xf32>
    %8 = vector.extract_strided_slice %6 {offsets = [0, 32], sizes = [16, 32], strides = [1, 1]} : vector<16x64xf32> to vector<16x32xf32>
    %9 = tpu.concatenate %7, %8 in 0 : vector<16x32xf32>, vector<16x32xf32> -> vector<32x32xf32>
    %cst = arith.constant dense<0.000000e+00> : vector<32x96xf32>
    %10 = tpu.matmul %9, %0, %cst {dimension_numbers = #tpu.dot_dimension_numbers<[1], [0], [0], [1], [0, 0, 1, 1], [], []>} : vector<32x32xf32>, vector<32x96xf32>, vector<32x96xf32> -> vector<32x96xf32>
    %11 = vector.broadcast %1 : vector<1x96xf32> to vector<32x96xf32>
    %12 = arith.addf %10, %11 : vector<32x96xf32>
    %13 = vector.extract_strided_slice %12 {offsets = [0, 0], sizes = [16, 96], strides = [1, 1]} : vector<32x96xf32> to vector<16x96xf32>
    %14 = vector.extract_strided_slice %13 {offsets = [0, 0], sizes = [16, 8], strides = [1, 1]} : vector<16x96xf32> to vector<16x8xf32>
    %15 = vector.extract_strided_slice %13 {offsets = [0, 32], sizes = [16, 8], strides = [1, 1]} : vector<16x96xf32> to vector<16x8xf32>
    %16 = vector.extract_strided_slice %13 {offsets = [0, 64], sizes = [16, 8], strides = [1, 1]} : vector<16x96xf32> to vector<16x8xf32>
    %cst_13 = arith.constant dense<0.000000e+00> : vector<16x16xf32>
    %17 = tpu.matmul %14, %15, %cst_13 {dimension_numbers = #tpu.dot_dimension_numbers<[1], [1], [0], [0], [0, 0, 1, 0], [], []>} : vector<16x8xf32>, vector<16x8xf32>, vector<16x16xf32> -> vector<16x16xf32>
    %cst_14 = arith.constant dense<0xFF800000> : vector<16xf32>
    %18 = vector.multi_reduction <maximumf>, %17, %cst_14 [1] : vector<16x16xf32> to vector<16xf32>
    %19 = vector.shape_cast %18 : vector<16xf32> to vector<16x1xf32>
    %20 = vector.broadcast %19 : vector<16x1xf32> to vector<16x16xf32>
    %21 = arith.subf %17, %20 : vector<16x16xf32>
    %22 = math.exp %21 : vector<16x16xf32>
    %cst_15 = arith.constant dense<0.000000e+00> : vector<16xf32>
    %23 = vector.multi_reduction <add>, %22, %cst_15 [1] : vector<16x16xf32> to vector<16xf32>
    %24 = vector.shape_cast %23 : vector<16xf32> to vector<16x1xf32>
    %cst_16 = arith.constant dense<0.000000e+00> : vector<16x8xf32>
    %25 = tpu.matmul %22, %16, %cst_16 {dimension_numbers = #tpu.dot_dimension_numbers<[1], [0], [0], [1], [0, 0, 1, 1], [], []>} : vector<16x16xf32>, vector<16x8xf32>, vector<16x8xf32> -> vector<16x8xf32>
    %26 = tpu.reciprocal %24 {approx = true} : vector<16x1xf32> -> vector<16x1xf32>
    %27 = vector.broadcast %26 : vector<16x1xf32> to vector<16x8xf32>
    %28 = arith.mulf %25, %27 : vector<16x8xf32>
    %29 = vector.extract_strided_slice %13 {offsets = [0, 8], sizes = [16, 8], strides = [1, 1]} : vector<16x96xf32> to vector<16x8xf32>
    %30 = vector.extract_strided_slice %13 {offsets = [0, 40], sizes = [16, 8], strides = [1, 1]} : vector<16x96xf32> to vector<16x8xf32>
    %31 = vector.extract_strided_slice %13 {offsets = [0, 72], sizes = [16, 8], strides = [1, 1]} : vector<16x96xf32> to vector<16x8xf32>
    %cst_17 = arith.constant dense<0.000000e+00> : vector<16x16xf32>
    %32 = tpu.matmul %29, %30, %cst_17 {dimension_numbers = #tpu.dot_dimension_numbers<[1], [1], [0], [0], [0, 0, 1, 0], [], []>} : vector<16x8xf32>, vector<16x8xf32>, vector<16x16xf32> -> vector<16x16xf32>
    %cst_18 = arith.constant dense<0xFF800000> : vector<16xf32>
    %33 = vector.multi_reduction <maximumf>, %32, %cst_18 [1] : vector<16x16xf32> to vector<16xf32>
    %34 = vector.shape_cast %33 : vector<16xf32> to vector<16x1xf32>
    %35 = vector.broadcast %34 : vector<16x1xf32> to vector<16x16xf32>
    %36 = arith.subf %32, %35 : vector<16x16xf32>
    %37 = math.exp %36 : vector<16x16xf32>
    %cst_19 = arith.constant dense<0.000000e+00> : vector<16xf32>
    %38 = vector.multi_reduction <add>, %37, %cst_19 [1] : vector<16x16xf32> to vector<16xf32>
    %39 = vector.shape_cast %38 : vector<16xf32> to vector<16x1xf32>
    %cst_20 = arith.constant dense<0.000000e+00> : vector<16x8xf32>
    %40 = tpu.matmul %37, %31, %cst_20 {dimension_numbers = #tpu.dot_dimension_numbers<[1], [0], [0], [1], [0, 0, 1, 1], [], []>} : vector<16x16xf32>, vector<16x8xf32>, vector<16x8xf32> -> vector<16x8xf32>
    %41 = tpu.reciprocal %39 {approx = true} : vector<16x1xf32> -> vector<16x1xf32>
    %42 = vector.broadcast %41 : vector<16x1xf32> to vector<16x8xf32>
    %43 = arith.mulf %40, %42 : vector<16x8xf32>
    %44 = vector.extract_strided_slice %13 {offsets = [0, 16], sizes = [16, 8], strides = [1, 1]} : vector<16x96xf32> to vector<16x8xf32>
    %45 = vector.extract_strided_slice %13 {offsets = [0, 48], sizes = [16, 8], strides = [1, 1]} : vector<16x96xf32> to vector<16x8xf32>
    %46 = vector.extract_strided_slice %13 {offsets = [0, 80], sizes = [16, 8], strides = [1, 1]} : vector<16x96xf32> to vector<16x8xf32>
    %cst_21 = arith.constant dense<0.000000e+00> : vector<16x16xf32>
    %47 = tpu.matmul %44, %45, %cst_21 {dimension_numbers = #tpu.dot_dimension_numbers<[1], [1], [0], [0], [0, 0, 1, 0], [], []>} : vector<16x8xf32>, vector<16x8xf32>, vector<16x16xf32> -> vector<16x16xf32>
    %cst_22 = arith.constant dense<0xFF800000> : vector<16xf32>
    %48 = vector.multi_reduction <maximumf>, %47, %cst_22 [1] : vector<16x16xf32> to vector<16xf32>
    %49 = vector.shape_cast %48 : vector<16xf32> to vector<16x1xf32>
    %50 = vector.broadcast %49 : vector<16x1xf32> to vector<16x16xf32>
    %51 = arith.subf %47, %50 : vector<16x16xf32>
    %52 = math.exp %51 : vector<16x16xf32>
    %cst_23 = arith.constant dense<0.000000e+00> : vector<16xf32>
    %53 = vector.multi_reduction <add>, %52, %cst_23 [1] : vector<16x16xf32> to vector<16xf32>
    %54 = vector.shape_cast %53 : vector<16xf32> to vector<16x1xf32>
    %cst_24 = arith.constant dense<0.000000e+00> : vector<16x8xf32>
    %55 = tpu.matmul %52, %46, %cst_24 {dimension_numbers = #tpu.dot_dimension_numbers<[1], [0], [0], [1], [0, 0, 1, 1], [], []>} : vector<16x16xf32>, vector<16x8xf32>, vector<16x8xf32> -> vector<16x8xf32>
    %56 = tpu.reciprocal %54 {approx = true} : vector<16x1xf32> -> vector<16x1xf32>
    %57 = vector.broadcast %56 : vector<16x1xf32> to vector<16x8xf32>
    %58 = arith.mulf %55, %57 : vector<16x8xf32>
    %59 = vector.extract_strided_slice %13 {offsets = [0, 24], sizes = [16, 8], strides = [1, 1]} : vector<16x96xf32> to vector<16x8xf32>
    %60 = vector.extract_strided_slice %13 {offsets = [0, 56], sizes = [16, 8], strides = [1, 1]} : vector<16x96xf32> to vector<16x8xf32>
    %61 = vector.extract_strided_slice %13 {offsets = [0, 88], sizes = [16, 8], strides = [1, 1]} : vector<16x96xf32> to vector<16x8xf32>
    %cst_25 = arith.constant dense<0.000000e+00> : vector<16x16xf32>
    %62 = tpu.matmul %59, %60, %cst_25 {dimension_numbers = #tpu.dot_dimension_numbers<[1], [1], [0], [0], [0, 0, 1, 0], [], []>} : vector<16x8xf32>, vector<16x8xf32>, vector<16x16xf32> -> vector<16x16xf32>
    %cst_26 = arith.constant dense<0xFF800000> : vector<16xf32>
    %63 = vector.multi_reduction <maximumf>, %62, %cst_26 [1] : vector<16x16xf32> to vector<16xf32>
    %64 = vector.shape_cast %63 : vector<16xf32> to vector<16x1xf32>
    %65 = vector.broadcast %64 : vector<16x1xf32> to vector<16x16xf32>
    %66 = arith.subf %62, %65 : vector<16x16xf32>
    %67 = math.exp %66 : vector<16x16xf32>
    %cst_27 = arith.constant dense<0.000000e+00> : vector<16xf32>
    %68 = vector.multi_reduction <add>, %67, %cst_27 [1] : vector<16x16xf32> to vector<16xf32>
    %69 = vector.shape_cast %68 : vector<16xf32> to vector<16x1xf32>
    %cst_28 = arith.constant dense<0.000000e+00> : vector<16x8xf32>
    %70 = tpu.matmul %67, %61, %cst_28 {dimension_numbers = #tpu.dot_dimension_numbers<[1], [0], [0], [1], [0, 0, 1, 1], [], []>} : vector<16x16xf32>, vector<16x8xf32>, vector<16x8xf32> -> vector<16x8xf32>
    %71 = tpu.reciprocal %69 {approx = true} : vector<16x1xf32> -> vector<16x1xf32>
    %72 = vector.broadcast %71 : vector<16x1xf32> to vector<16x8xf32>
    %73 = arith.mulf %70, %72 : vector<16x8xf32>
    %74 = tpu.concatenate %28, %43, %58, %73 in 1 : vector<16x8xf32>, vector<16x8xf32>, vector<16x8xf32>, vector<16x8xf32> -> vector<16x32xf32>
    %75 = vector.extract_strided_slice %12 {offsets = [16, 0], sizes = [16, 96], strides = [1, 1]} : vector<32x96xf32> to vector<16x96xf32>
    %76 = vector.extract_strided_slice %75 {offsets = [0, 0], sizes = [16, 8], strides = [1, 1]} : vector<16x96xf32> to vector<16x8xf32>
    %77 = vector.extract_strided_slice %75 {offsets = [0, 32], sizes = [16, 8], strides = [1, 1]} : vector<16x96xf32> to vector<16x8xf32>
    %78 = vector.extract_strided_slice %75 {offsets = [0, 64], sizes = [16, 8], strides = [1, 1]} : vector<16x96xf32> to vector<16x8xf32>
    %cst_29 = arith.constant dense<0.000000e+00> : vector<16x16xf32>
    %79 = tpu.matmul %76, %77, %cst_29 {dimension_numbers = #tpu.dot_dimension_numbers<[1], [1], [0], [0], [0, 0, 1, 0], [], []>} : vector<16x8xf32>, vector<16x8xf32>, vector<16x16xf32> -> vector<16x16xf32>
    %cst_30 = arith.constant dense<0xFF800000> : vector<16xf32>
    %80 = vector.multi_reduction <maximumf>, %79, %cst_30 [1] : vector<16x16xf32> to vector<16xf32>
    %81 = vector.shape_cast %80 : vector<16xf32> to vector<16x1xf32>
    %82 = vector.broadcast %81 : vector<16x1xf32> to vector<16x16xf32>
    %83 = arith.subf %79, %82 : vector<16x16xf32>
    %84 = math.exp %83 : vector<16x16xf32>
    %cst_31 = arith.constant dense<0.000000e+00> : vector<16xf32>
    %85 = vector.multi_reduction <add>, %84, %cst_31 [1] : vector<16x16xf32> to vector<16xf32>
    %86 = vector.shape_cast %85 : vector<16xf32> to vector<16x1xf32>
    %cst_32 = arith.constant dense<0.000000e+00> : vector<16x8xf32>
    %87 = tpu.matmul %84, %78, %cst_32 {dimension_numbers = #tpu.dot_dimension_numbers<[1], [0], [0], [1], [0, 0, 1, 1], [], []>} : vector<16x16xf32>, vector<16x8xf32>, vector<16x8xf32> -> vector<16x8xf32>
    %88 = tpu.reciprocal %86 {approx = true} : vector<16x1xf32> -> vector<16x1xf32>
    %89 = vector.broadcast %88 : vector<16x1xf32> to vector<16x8xf32>
    %90 = arith.mulf %87, %89 : vector<16x8xf32>
    %91 = vector.extract_strided_slice %75 {offsets = [0, 8], sizes = [16, 8], strides = [1, 1]} : vector<16x96xf32> to vector<16x8xf32>
    %92 = vector.extract_strided_slice %75 {offsets = [0, 40], sizes = [16, 8], strides = [1, 1]} : vector<16x96xf32> to vector<16x8xf32>
    %93 = vector.extract_strided_slice %75 {offsets = [0, 72], sizes = [16, 8], strides = [1, 1]} : vector<16x96xf32> to vector<16x8xf32>
    %cst_33 = arith.constant dense<0.000000e+00> : vector<16x16xf32>
    %94 = tpu.matmul %91, %92, %cst_33 {dimension_numbers = #tpu.dot_dimension_numbers<[1], [1], [0], [0], [0, 0, 1, 0], [], []>} : vector<16x8xf32>, vector<16x8xf32>, vector<16x16xf32> -> vector<16x16xf32>
    %cst_34 = arith.constant dense<0xFF800000> : vector<16xf32>
    %95 = vector.multi_reduction <maximumf>, %94, %cst_34 [1] : vector<16x16xf32> to vector<16xf32>
    %96 = vector.shape_cast %95 : vector<16xf32> to vector<16x1xf32>
    %97 = vector.broadcast %96 : vector<16x1xf32> to vector<16x16xf32>
    %98 = arith.subf %94, %97 : vector<16x16xf32>
    %99 = math.exp %98 : vector<16x16xf32>
    %cst_35 = arith.constant dense<0.000000e+00> : vector<16xf32>
    %100 = vector.multi_reduction <add>, %99, %cst_35 [1] : vector<16x16xf32> to vector<16xf32>
    %101 = vector.shape_cast %100 : vector<16xf32> to vector<16x1xf32>
    %cst_36 = arith.constant dense<0.000000e+00> : vector<16x8xf32>
    %102 = tpu.matmul %99, %93, %cst_36 {dimension_numbers = #tpu.dot_dimension_numbers<[1], [0], [0], [1], [0, 0, 1, 1], [], []>} : vector<16x16xf32>, vector<16x8xf32>, vector<16x8xf32> -> vector<16x8xf32>
    %103 = tpu.reciprocal %101 {approx = true} : vector<16x1xf32> -> vector<16x1xf32>
    %104 = vector.broadcast %103 : vector<16x1xf32> to vector<16x8xf32>
    %105 = arith.mulf %102, %104 : vector<16x8xf32>
    %106 = vector.extract_strided_slice %75 {offsets = [0, 16], sizes = [16, 8], strides = [1, 1]} : vector<16x96xf32> to vector<16x8xf32>
    %107 = vector.extract_strided_slice %75 {offsets = [0, 48], sizes = [16, 8], strides = [1, 1]} : vector<16x96xf32> to vector<16x8xf32>
    %108 = vector.extract_strided_slice %75 {offsets = [0, 80], sizes = [16, 8], strides = [1, 1]} : vector<16x96xf32> to vector<16x8xf32>
    %cst_37 = arith.constant dense<0.000000e+00> : vector<16x16xf32>
    %109 = tpu.matmul %106, %107, %cst_37 {dimension_numbers = #tpu.dot_dimension_numbers<[1], [1], [0], [0], [0, 0, 1, 0], [], []>} : vector<16x8xf32>, vector<16x8xf32>, vector<16x16xf32> -> vector<16x16xf32>
    %cst_38 = arith.constant dense<0xFF800000> : vector<16xf32>
    %110 = vector.multi_reduction <maximumf>, %109, %cst_38 [1] : vector<16x16xf32> to vector<16xf32>
    %111 = vector.shape_cast %110 : vector<16xf32> to vector<16x1xf32>
    %112 = vector.broadcast %111 : vector<16x1xf32> to vector<16x16xf32>
    %113 = arith.subf %109, %112 : vector<16x16xf32>
    %114 = math.exp %113 : vector<16x16xf32>
    %cst_39 = arith.constant dense<0.000000e+00> : vector<16xf32>
    %115 = vector.multi_reduction <add>, %114, %cst_39 [1] : vector<16x16xf32> to vector<16xf32>
    %116 = vector.shape_cast %115 : vector<16xf32> to vector<16x1xf32>
    %cst_40 = arith.constant dense<0.000000e+00> : vector<16x8xf32>
    %117 = tpu.matmul %114, %108, %cst_40 {dimension_numbers = #tpu.dot_dimension_numbers<[1], [0], [0], [1], [0, 0, 1, 1], [], []>} : vector<16x16xf32>, vector<16x8xf32>, vector<16x8xf32> -> vector<16x8xf32>
    %118 = tpu.reciprocal %116 {approx = true} : vector<16x1xf32> -> vector<16x1xf32>
    %119 = vector.broadcast %118 : vector<16x1xf32> to vector<16x8xf32>
    %120 = arith.mulf %117, %119 : vector<16x8xf32>
    %121 = vector.extract_strided_slice %75 {offsets = [0, 24], sizes = [16, 8], strides = [1, 1]} : vector<16x96xf32> to vector<16x8xf32>
    %122 = vector.extract_strided_slice %75 {offsets = [0, 56], sizes = [16, 8], strides = [1, 1]} : vector<16x96xf32> to vector<16x8xf32>
    %123 = vector.extract_strided_slice %75 {offsets = [0, 88], sizes = [16, 8], strides = [1, 1]} : vector<16x96xf32> to vector<16x8xf32>
    %cst_41 = arith.constant dense<0.000000e+00> : vector<16x16xf32>
    %124 = tpu.matmul %121, %122, %cst_41 {dimension_numbers = #tpu.dot_dimension_numbers<[1], [1], [0], [0], [0, 0, 1, 0], [], []>} : vector<16x8xf32>, vector<16x8xf32>, vector<16x16xf32> -> vector<16x16xf32>
    %cst_42 = arith.constant dense<0xFF800000> : vector<16xf32>
    %125 = vector.multi_reduction <maximumf>, %124, %cst_42 [1] : vector<16x16xf32> to vector<16xf32>
    %126 = vector.shape_cast %125 : vector<16xf32> to vector<16x1xf32>
    %127 = vector.broadcast %126 : vector<16x1xf32> to vector<16x16xf32>
    %128 = arith.subf %124, %127 : vector<16x16xf32>
    %129 = math.exp %128 : vector<16x16xf32>
    %cst_43 = arith.constant dense<0.000000e+00> : vector<16xf32>
    %130 = vector.multi_reduction <add>, %129, %cst_43 [1] : vector<16x16xf32> to vector<16xf32>
    %131 = vector.shape_cast %130 : vector<16xf32> to vector<16x1xf32>
    %cst_44 = arith.constant dense<0.000000e+00> : vector<16x8xf32>
    %132 = tpu.matmul %129, %123, %cst_44 {dimension_numbers = #tpu.dot_dimension_numbers<[1], [0], [0], [1], [0, 0, 1, 1], [], []>} : vector<16x16xf32>, vector<16x8xf32>, vector<16x8xf32> -> vector<16x8xf32>
    %133 = tpu.reciprocal %131 {approx = true} : vector<16x1xf32> -> vector<16x1xf32>
    %134 = vector.broadcast %133 : vector<16x1xf32> to vector<16x8xf32>
    %135 = arith.mulf %132, %134 : vector<16x8xf32>
    %136 = tpu.concatenate %90, %105, %120, %135 in 1 : vector<16x8xf32>, vector<16x8xf32>, vector<16x8xf32>, vector<16x8xf32> -> vector<16x32xf32>
    %137 = tpu.concatenate %74, %136 in 0 : vector<16x32xf32>, vector<16x32xf32> -> vector<32x32xf32>
    %cst_45 = arith.constant dense<0.000000e+00> : vector<32x32xf32>
    %138 = tpu.matmul %137, %2, %cst_45 {dimension_numbers = #tpu.dot_dimension_numbers<[1], [0], [0], [1], [0, 0, 1, 1], [], []>} : vector<32x32xf32>, vector<32x32xf32>, vector<32x32xf32> -> vector<32x32xf32>
    %139 = vector.broadcast %3 : vector<1x32xf32> to vector<32x32xf32>
    %140 = arith.addf %138, %139 : vector<32x32xf32>
    %141 = arith.addf %140, %9 : vector<32x32xf32>
    %cst_46 = arith.constant dense<0.000000e+00> : vector<32xf32>
    %142 = vector.multi_reduction <add>, %141, %cst_46 [1] : vector<32x32xf32> to vector<32xf32>
    %143 = vector.shape_cast %142 : vector<32xf32> to vector<32x1xf32>
    %cst_47 = arith.constant 3.200000e+01 : f32
    %144 = vector.broadcast %cst_47 : f32 to vector<32x1xf32>
    %145 = arith.divf %143, %144 : vector<32x1xf32>
    %146 = vector.broadcast %145 : vector<32x1xf32> to vector<32x32xf32>
    %147 = arith.subf %141, %146 : vector<32x32xf32>
    %148 = arith.mulf %147, %147 : vector<32x32xf32>
    %cst_48 = arith.constant dense<0.000000e+00> : vector<32xf32>
    %149 = vector.multi_reduction <add>, %148, %cst_48 [1] : vector<32x32xf32> to vector<32xf32>
    %150 = vector.shape_cast %149 : vector<32xf32> to vector<32x1xf32>
    %cst_49 = arith.constant 3.200000e+01 : f32
    %151 = vector.broadcast %cst_49 : f32 to vector<32x1xf32>
    %152 = arith.divf %150, %151 : vector<32x1xf32>
    %cst_50 = arith.constant 9.99999974E-6 : f32
    %153 = vector.broadcast %cst_50 : f32 to vector<32x1xf32>
    %154 = arith.addf %152, %153 : vector<32x1xf32>
    %155 = math.rsqrt %154 : vector<32x1xf32>
    %156 = vector.broadcast %155 : vector<32x1xf32> to vector<32x32xf32>
    %157 = arith.mulf %147, %156 : vector<32x32xf32>
    %158 = vector.broadcast %4 : vector<1x32xf32> to vector<32x32xf32>
    %159 = arith.mulf %157, %158 : vector<32x32xf32>
    %160 = vector.broadcast %5 : vector<1x32xf32> to vector<32x32xf32>
    %161 = arith.addf %159, %160 : vector<32x32xf32>
    %162 = vector.extract_strided_slice %161 {offsets = [0, 0], sizes = [16, 32], strides = [1, 1]} : vector<32x32xf32> to vector<16x32xf32>
    %163 = vector.extract_strided_slice %161 {offsets = [16, 0], sizes = [16, 32], strides = [1, 1]} : vector<32x32xf32> to vector<16x32xf32>
    %164 = tpu.concatenate %162, %163 in 1 : vector<16x32xf32>, vector<16x32xf32> -> vector<16x64xf32>
    %c0_51 = arith.constant 0 : index
    %c0_52 = arith.constant 0 : index
    %165 = vector.load %arg8[%c0_51, %c0_52] : memref<16x64xf32, #tpu.memory_space<vmem>>, vector<16x64xf32>
    tpu.vector_store %arg8[%c0_51, %c0_52], %164 {strides = array<i32>} : memref<16x64xf32, #tpu.memory_space<vmem>>, vector<16x64xf32>,
    return
  }
  func.func @transform_0(%arg0: i32) -> (i32, i32) {
    %c0_i32 = arith.constant 0 : i32
    %c0_i32_0 = arith.constant 0 : i32
    return %c0_i32, %arg0 : i32, i32
  }
  func.func @transform_1(%arg0: i32) -> (i32, i32) {
    %c0_i32 = arith.constant 0 : i32
    %c0_i32_0 = arith.constant 0 : i32
    %c0_i32_1 = arith.constant 0 : i32
    return %c0_i32, %c0_i32_0 : i32, i32
  }
  func.func @transform_2(%arg0: i32) -> (i32, i32) {
    %c0_i32 = arith.constant 0 : i32
    %c0_i32_0 = arith.constant 0 : i32
    %c0_i32_1 = arith.constant 0 : i32
    return %c0_i32, %c0_i32_0 : i32, i32
  }
  func.func @transform_3(%arg0: i32) -> (i32, i32) {
    %c0_i32 = arith.constant 0 : i32
    %c0_i32_0 = arith.constant 0 : i32
    %c0_i32_1 = arith.constant 0 : i32
    return %c0_i32, %c0_i32_0 : i32, i32
  }
  func.func @transform_4(%arg0: i32) -> (i32, i32) {
    %c0_i32 = arith.constant 0 : i32
    %c0_i32_0 = arith.constant 0 : i32
    %c0_i32_1 = arith.constant 0 : i32
    return %c0_i32, %c0_i32_0 : i32, i32
  }
  func.func @transform_5(%arg0: i32) -> (i32, i32) {
    %c0_i32 = arith.constant 0 : i32
    %c0_i32_0 = arith.constant 0 : i32
    %c0_i32_1 = arith.constant 0 : i32
    return %c0_i32, %c0_i32_0 : i32, i32
  }
  func.func @transform_6(%arg0: i32) -> (i32, i32) {
    %c0_i32 = arith.constant 0 : i32
    %c0_i32_0 = arith.constant 0 : i32
    %c0_i32_1 = arith.constant 0 : i32
    return %c0_i32, %c0_i32_0 : i32, i32
  }
  func.func @transform_7(%arg0: i32) -> (i32, i32) {
    %c0_i32 = arith.constant 0 : i32
    %c0_i32_0 = arith.constant 0 : i32
    return %c0_i32, %arg0 : i32, i32
  }
}

</mosaic_0001>

<bundles_post_ra>
// kernel: tpu_custom_call.1
= control target key start
LH: loop header
LB: loop body
LE: loop exit
PB: predicated region body
PF: predicated region fallthrough
CT: control target
= control target key end

     0   :  { %12 = vsyncpa [#allocation3], 0  ;;  %s1851_s0 = inlined_call_operand.hbm [shape: f32[16,64], index: 0, kind: input, shape index: {}]   ;;  %s1852_s1 = inlined_call_operand.hbm [shape: f32[32,96], index: 1, kind: input, shape index: {}]   ;;  %s1853_s2 = inlined_call_operand.vmem [shape: f32[1,96], index: 2, kind: input, shape index: {}]   ;;  %s1854_s3 = inlined_call_operand.hbm [shape: f32[32,32], index: 3, kind: input, shape index: {}]   ;;  %s1855_s4 = inlined_call_operand.vmem [shape: f32[1,32], index: 4, kind: input, shape index: {}]   ;;  %s1856_s5 = inlined_call_operand.vmem [shape: f32[1,32], index: 5, kind: input, shape index: {}]   ;;  %s1857_s6 = inlined_call_operand.vmem [shape: f32[1,32], index: 6, kind: input, shape index: {}]   ;;  %s1858_s7 = inlined_call_operand.hbm [shape: f32[16,64], index: 7, kind: output, shape index: {}]  }
   0x1   :  { %13 = vsyncpa [#allocation6], 0 }
   0x2   :  { %14 = vsyncpa [#allocation4], 0  ;;  %s32_s26 = sshll.u32 %s1852_s1, 4  ;;  %s1451_s27 = smov [#allocation5]   ;;  %s33_s26 = int_to_ptr.hbm [resolvable:$true] %s32_s26 }
   0x3   :  { %s34_s28 = sshll.u32 %s1451_s27, 4  ;;  %s19_s8 = sshll.u32 %s1851_s0, 4  ;;  %s35_s28 = int_to_ptr.vmem [resolvable:$true] %s34_s28  ;;  %s20_s8 = int_to_ptr.hbm [resolvable:$true] %s19_s8 }
   0x4   :  { %s1452_s9 = smov 128   ;;  %s1453_s10 = smov 8  }
   0x5   :  { %40 = dma.hbm_to_vmem [thread:$0]  %s33_s26, 512, %s35_s28, [#allocation6], %s1452_s9, %s1452_s9, %s1453_s10  }
   0x6   :  { %s1454_s11 = smov [#allocation2]   ;;  %s47_s1 = sshll.u32 %s1854_s3, 4  ;;  %s48_s1 = int_to_ptr.hbm [resolvable:$true] %s47_s1 }
   0x7   :  { %s21_s12 = sshll.u32 %s1454_s11, 4  ;;  %s1455_s0 = smov [#allocation7]   ;;  %s22_s12 = int_to_ptr.vmem [resolvable:$true] %s21_s12 }
   0x8   :  { %27 = dma.hbm_to_vmem [thread:$0]  %s20_s8, 256, %s22_s12, [#allocation3], %s1452_s9, %s1452_s9, %s1453_s10  }
   0x9   :  { %s49_s15 = sshll.u32 %s1455_s0, 4  ;;  %s50_s15 = int_to_ptr.vmem [resolvable:$true] %s49_s15 }
   0xa   :  { %55 = dma.hbm_to_vmem [thread:$0]  %s48_s1, 512, %s50_s15, [#allocation6], %s1452_s9, %s1452_s9, %s1453_s10  }
   0xb   :  { %1445 = dma.done.wait [#allocation3], 256  }
   0xc   :  { %1446 = vsyncadd [#allocation3], 4294967040 }
   0xd   :  { %1447 = dma.done.wait [#allocation6], 1024  }
   0xe   :  { %1448 = vsyncadd [#allocation6], 4294966272  ;;  %v77_v0 = vld [vmem:[#allocation5 + $0x18] sm:$0xff]  ;;  %v76_v1 = vld [vmem:[#allocation5 + $0x10] sm:$0xff]  ;;  %vm99_vm0 = vcmask 261120   ;;  %s1456_s17 = smov 120  }
   0xf   :  { %120 = vmatpush.msra.mxu0 %v77_v0  ;;  %v75_v2 = vld [vmem:[#allocation5 + $0x8] sm:$0xff]  ;;  %v74_v3 = vld [vmem:[#allocation5] sm:$0xff]  ;;  %v1530_v4 = vld [vmem:[#allocation2] sm:$0xff]  ;;  %s1457_s18 = smov 88   ;;  %s1458_s19 = smov 96   ;;  %vm143_vm1 = vcmask 64512  }
  0x10   :  { %v1534_v5 = vld [vmem:[#allocation2 + $0x8] sm:$0xff]  ;;  %v1541_v6 = vld [vmem:[%s1853_s2] ss:$0 sm:$0xff]  ;;  %s1459_s2 = smov 72   ;;  %s1460_s20 = smov 104   ;;  %vm175_vm2 = vcmask 130048  }
  0x11   :  { %121 = vmatpush.msra.mxu0 %v76_v1  ;;  %s1461_s21 = smov 64   ;;  %s1462_s22 = smov 80   ;;  %vm549_vm3 = vcmask 195584  }
  0x12   :  { %s1463_s23 = smov 56   ;;  %s1464_s24 = smov 112  }
  0x13   :  { %122 = vmatpush.msra.mxu0 %v75_v2  ;;  %s1465_s25 = smov 48   ;;  %s1466_s26 = smov 40  }
  0x14   :  { %s1467_s27 = smov 16   ;;  %s1468_s28 = smov 24  }
  0x15   :  { %123 = vmatpush.msra.mxu0 %v74_v3  ;;  %s1140_s0 = sshll.u32 %s1858_s7, 4  ;;  %s1141_s0 = int_to_ptr.hbm [resolvable:$true] %s1140_s0 }
  0x16   :  { %1154 = vmatmul.msk.f32.vlgmr.msra.gmra.mxu0 %vm99_vm0, %v1530_v4 }
  0x1e   :  { %1155 = vmatmul.msk.f32.gmra.mxu0 %vm99_vm0, %v1534_v5 }
  0x93   :  { %v125_v7 = vpop.f32.mrf.mxu0 }
  0x94   :  { %v126_v8 = vadd.f32 %v1541_v6, %v125_v7 }
  0x96   :  { %233 = vrot.lane.b32.xlu2 %v126_v8, %s1456_s17 }
  0x9b   :  { %v128_v9 = vpop.f32.mrf.mxu0 }
  0x9c   :  { %v1546_v10 = vadd.f32 %v1541_v6, %v128_v9 }
  0x9e   :  { %239 = vrot.lane.b32.xlu1 %v1546_v10, %s1457_s18  ;;  %141 = vrot.lane.b32.xlu0 %v1546_v10, %s1458_s19  ;;  %v1563_v11 = vpack.i.bf16 %v126_v8, %v1546_v10 }
  0x9f   :  { %235 = vrot.lane.b32.xlu2 %v1546_v10, %s1456_s17 }
  0xa6   :  { %237 = vrot.lane.b32.xlu1 %v126_v8, %s1457_s18  ;;  %139 = vrot.lane.b32.xlu0 %v126_v8, %s1458_s19 }
  0xa7   :  { %429 = vrot.lane.b32.xlu2 %v126_v8, %s1459_s2 }
  0xae   :  { %92 = vrot.lane.b32.xlu1 %v1534_v5, %s1458_s19  ;;  %90 = vrot.lane.b32.xlu0 %v1530_v4, %s1458_s19 }
  0xaf   :  { %425 = vrot.lane.b32.xlu2 %v126_v8, %s1460_s20 }
  0xb6   :  { %1232 = vrot.lane.b32.xlu1 %v1563_v11, %s1461_s21  ;;  %333 = vrot.lane.b32.xlu0 %v126_v8, %s1462_s22 }
  0xb7   :  { %1237 = vrot.lane.b32.xlu2 %v1563_v11, %s1463_s23 }
  0xbe   :  { %431 = vrot.lane.b32.xlu1 %v1546_v10, %s1459_s2  ;;  %329 = vrot.lane.b32.xlu0 %v126_v8, %s1464_s24 }
  0xc6   :  { %331 = vrot.lane.b32.xlu1 %v1546_v10, %s1464_s24  ;;  %335 = vrot.lane.b32.xlu0 %v1546_v10, %s1462_s22 }
  0xf0   :  { %v234_v12 = vpop.permute.xlu2 %233 }
  0xf9   :  { %v236_v13 = vpop.permute.xlu2 %235 }
 0x101   :  { %v1578_v16 = vpop.permute.xlu2 %429 }
 0x109   :  { %v1584_v19 = vpop.permute.xlu2 %425 }
 0x110   :  { %v240_v14 = vpop.permute.xlu1 %239  ;;  %v142_v15 = vpop.permute.xlu0 %141 }
 0x111   :  { %1158 = vmatpush.xpose.msk.msra.mxu3 %vm143_vm1, %v142_v15  ;;  %v1238_v24 = vpop.permute.xlu2 %1237 }
 0x112   :  { %v1239_v27 = vunpack.i.l.bf16 %v1238_v24  ;;  %v1240_v28 = vunpack.i.h.bf16 %v1238_v24 }
 0x118   :  { %v238_v17 = vpop.permute.xlu1 %237  ;;  %v140_v18 = vpop.permute.xlu0 %139 }
 0x119   :  { %1159 = vmatpush.xpose.msk.msra.mxu3 %vm143_vm1, %v140_v18 }
 0x11c   :  { %1160 = vmatmul.msk.f32.vlgmr.msra.gmra.mxu3 %vm143_vm1, %v126_v8 }
 0x11d   :  { %1164 = vmatpush.xpose.msk.msrb.mxu3 %vm143_vm1, %v240_v14 }
 0x120   :  { %v1586_v20 = vpop.permute.xlu1 %92  ;;  %v1588_v21 = vpop.permute.xlu0 %90 }
 0x121   :  { %1165 = vmatpush.xpose.msk.msrb.mxu3 %vm143_vm1, %v238_v17  ;;  %1156 = vmatmul.msk.f32.gmra.mxu0 %vm99_vm0, %v1588_v21 }
 0x124   :  { %1161 = vmatmul.msk.f32.gmra.mxu3 %vm143_vm1, %v1546_v10 }
 0x128   :  { %v1233_v22 = vpop.permute.xlu1 %1232  ;;  %v334_v23 = vpop.permute.xlu0 %333 }
 0x129   :  { %v1234_v25 = vunpack.i.l.bf16 %v1233_v22  ;;  %1157 = vmatmul.msk.f32.gmra.mxu0 %vm99_vm0, %v1586_v20  ;;  %v1235_v26 = vunpack.i.h.bf16 %v1233_v22 }
 0x12b   :  { %220 = vmatpush.msra.mxu2 %v1234_v25 }
 0x12c   :  { %1166 = vmatmul.msk.f32.vlgmr.msrb.gmra.mxu3 %vm143_vm1, %v234_v12 }
 0x12d   :  { %221 = vmatpush.msra.mxu2 %v1235_v26 }
 0x12f   :  { %316 = vmatpush.msrb.mxu2 %v1239_v27 }
 0x130   :  { %v330_v29 = vpop.permute.xlu0 %329  ;;  %v432_v31 = vpop.permute.xlu1 %431 }
 0x131   :  { %317 = vmatpush.msrb.mxu2 %v1240_v28 }
 0x134   :  { %1167 = vmatmul.msk.f32.gmra.mxu3 %vm143_vm1, %v236_v13 }
 0x138   :  { %v336_v30 = vpop.permute.xlu0 %335  ;;  %v332_v32 = vpop.permute.xlu1 %331 }
 0x139   :  { %1170 = vmatpush.xpose.msk.msra.mxu1 %vm143_vm1, %v336_v30 }
 0x13d   :  { %1171 = vmatpush.xpose.msk.msra.mxu1 %vm143_vm1, %v334_v23 }
 0x140   :  { %1172 = vmatmul.msk.f32.vlgmr.msra.gmra.mxu1 %vm143_vm1, %v330_v29 }
 0x148   :  { %1173 = vmatmul.msk.f32.gmra.mxu1 %vm143_vm1, %v332_v32 }
 0x19e   :  { %v131_v37 = vpop.f32.mrf.mxu0 }
 0x19f   :  { %v169_v33 = vpop.f32.mrf.mxu3  ;;  %v132_v42 = vadd.f32 %v1541_v6, %v131_v37 }
 0x1a0   :  { %v176_v34 = vsel %vm175_vm2, %v169_v33, -inf }
 0x1a1   :  { %177 = vmax.xlane.f32.xlu2 %v176_v34 }
 0x1a6   :  { %v134_v40 = vpop.f32.mrf.mxu0 }
 0x1a7   :  { %v172_v35 = vpop.f32.mrf.mxu3  ;;  %v1606_v41 = vadd.f32 %v1541_v6, %v134_v40 }
 0x1a8   :  { %v179_v36 = vsel %vm175_vm2, %v172_v35, -inf }
 0x1a9   :  { %180 = vmax.xlane.f32.xlu0 %v179_v36  ;;  %v1642_v52 = vpack.i.bf16 %v132_v42, %v1606_v41 }
 0x1af   :  { %v266_v38 = vpop.f32.mrf.mxu3 }
 0x1b0   :  { %v272_v39 = vsel %vm175_vm2, %v266_v38, -inf }
 0x1b1   :  { %273 = vmax.xlane.f32.xlu1 %v272_v39 }
 0x1b7   :  { %v269_v43 = vpop.f32.mrf.mxu3 }
 0x1b8   :  { %v275_v44 = vsel %vm175_vm2, %v269_v43, -inf }
 0x1b9   :  { %556 = vrot.lane.b32.xlu2 %v1606_v41, %s1458_s19 }
 0x1bd   :  { %427 = vrot.lane.b32.xlu0 %v1546_v10, %s1460_s20  ;;  %v1630_v45 = vpop.f32.mrf.mxu1 }
 0x1be   :  { %v368_v46 = vsel %vm175_vm2, %v1630_v45, -inf }
 0x1c1   :  { %650 = vrot.lane.b32.xlu2 %v132_v42, %s1457_s18 }
 0x1c5   :  { %554 = vrot.lane.b32.xlu0 %v132_v42, %s1458_s19  ;;  %v1635_v47 = vpop.f32.mrf.mxu1 }
 0x1c6   :  { %v371_v48 = vsel %vm175_vm2, %v1635_v47, -inf }
 0x1ca   :  { %652 = vrot.lane.b32.xlu1 %v1606_v41, %s1457_s18 }
 0x1cd   :  { %648 = vrot.lane.b32.xlu0 %v1606_v41, %s1456_s17 }
 0x1d2   :  { %646 = vrot.lane.b32.xlu1 %v132_v42, %s1456_s17 }
 0x1d5   :  { %746 = vrot.lane.b32.xlu0 %v132_v42, %s1462_s22 }
 0x1da   :  { %844 = vrot.lane.b32.xlu1 %v1606_v41, %s1459_s2 }
 0x1dd   :  { %838 = vrot.lane.b32.xlu0 %v132_v42, %s1460_s20 }
 0x1e2   :  { %742 = vrot.lane.b32.xlu1 %v132_v42, %s1464_s24 }
 0x1ea   :  { %840 = vrot.lane.b32.xlu1 %v1606_v41, %s1460_s20  ;;  %276 = vmax.xlane.f32.xlu2 %v275_v44 }
 0x202   :  { %748 = vrot.lane.b32.xlu2 %v1606_v41, %s1462_s22 }
 0x207   :  { %369 = vmax.xlane.f32.xlu0 %v368_v46 }
 0x20a   :  { %842 = vrot.lane.b32.xlu2 %v132_v42, %s1459_s2 }
 0x212   :  { %744 = vrot.lane.b32.xlu2 %v1606_v41, %s1464_s24 }
 0x214   :  { %v178_v49 = vpop.xlane.xlu2 %177  ;;  %372 = vmax.xlane.f32.xlu1 %v371_v48 }
 0x215   :  { %v182_v50 = vsub.f32 %v169_v33, %v178_v49 }
 0x217   :  { %v184_v51 = vmul.f32 1.442695, %v182_v50 }
 0x219   :  { %1275 = vpow2.f32 %v184_v51 }
 0x21a   :  { %1252 = vrot.lane.b32.xlu2 %v1642_v52, %s1461_s21 }
 0x21b   :  { %1242 = vrot.lane.b32.xlu0 %v1563_v11, %s1465_s25 }
 0x21c   :  { %v557_v53 = vpop.permute.xlu2 %556  ;;  %v181_v54 = vpop.xlane.xlu0 %180 }
 0x21d   :  { %v183_v55 = vsub.f32 %v172_v35, %v181_v54  ;;  %1182 = vmatpush.xpose.msk.msrb.mxu1 %vm143_vm1, %v557_v53 }
 0x21f   :  { %v1649_v56 = vpop.eup %1275  ;;  %v186_v57 = vmul.f32 1.442695, %v183_v55 }
 0x220   :  { %1162 = vmatmul.msk.f32.vlgmr.msra.gmra.mxu2 %vm175_vm2, %v1649_v56 }
 0x221   :  { %1277 = vpow2.f32 %v186_v57  ;;  %1176 = vmatpush.xpose.msk.msra.mxu2 %vm143_vm1, %v432_v31 }
 0x222   :  { %1257 = vrot.lane.b32.xlu2 %v1642_v52, %s1463_s23 }
 0x224   :  { %v274_v58 = vpop.xlane.xlu1 %273  ;;  %v651_v2 = vpop.permute.xlu2 %650 }
 0x225   :  { %1177 = vmatpush.xpose.msk.msra.mxu2 %vm143_vm1, %v1578_v16  ;;  %v278_v59 = vsub.f32 %v266_v38, %v274_v58 }
 0x227   :  { %v1658_v60 = vpop.eup %1277  ;;  %v280_v61 = vmul.f32 1.442695, %v278_v59 }
 0x228   :  { %1163 = vmatmul.msk.f32.gmra.mxu2 %vm175_vm2, %v1658_v60 }
 0x229   :  { %1279 = vpow2.f32 %v280_v61 }
 0x22d   :  { %1247 = vrot.lane.b32.xlu1 %v1563_v11, %s1466_s26 }
 0x22f   :  { %v1664_v62 = vpop.eup %1279  ;;  %v428_v63 = vpop.permute.xlu0 %427 }
 0x230   :  { %1168 = vmatmul.msk.f32.vlgmr.msrb.gmra.mxu2 %vm175_vm2, %v1664_v62 }
 0x237   :  { %v555_v0 = vpop.permute.xlu0 %554 }
 0x238   :  { %1183 = vmatpush.xpose.msk.msrb.mxu1 %vm143_vm1, %v555_v0 }
 0x23b   :  { %1184 = vmatmul.msk.f32.vlgmr.msrb.gmra.mxu1 %vm143_vm1, %v132_v42 }
 0x23c   :  { %v653_v1 = vpop.permute.xlu1 %652 }
 0x23d   :  { %1188 = vmatpush.xpose.msk.msrb.mxu2 %vm143_vm1, %v653_v1 }
 0x23f   :  { %v649_v8 = vpop.permute.xlu0 %648 }
 0x241   :  { %1189 = vmatpush.xpose.msk.msrb.mxu2 %vm143_vm1, %v651_v2 }
 0x243   :  { %1185 = vmatmul.msk.f32.gmra.mxu1 %vm143_vm1, %v1606_v41 }
 0x244   :  { %v647_v3 = vpop.permute.xlu1 %646 }
 0x247   :  { %v747_v13 = vpop.permute.xlu0 %746 }
 0x24c   :  { %v845_v10 = vpop.permute.xlu1 %844 }
 0x24f   :  { %v839_v17 = vpop.permute.xlu0 %838 }
 0x254   :  { %v743_v14 = vpop.permute.xlu1 %742 }
 0x25c   :  { %v841_v18 = vpop.permute.xlu1 %840 }
 0x25d   :  { %v277_v6 = vpop.xlane.xlu2 %276 }
 0x25e   :  { %v279_v7 = vsub.f32 %v269_v43, %v277_v6 }
 0x260   :  { %v282_v9 = vmul.f32 1.442695, %v279_v7 }
 0x262   :  { %1281 = vpow2.f32 %v282_v9 }
 0x265   :  { %v749_v11 = vpop.permute.xlu2 %748 }
 0x266   :  { %1194 = vmatpush.xpose.msk.msra.mxu1 %vm143_vm1, %v749_v11 }
 0x268   :  { %v1675_v12 = vpop.eup %1281 }
 0x269   :  { %1169 = vmatmul.msk.f32.gmra.mxu2 %vm175_vm2, %v1675_v12  ;;  %v287_v6 = vsel %vm175_vm2, %v1675_v12, 0.0 }
 0x26a   :  { %1195 = vmatpush.xpose.msk.msra.mxu1 %vm143_vm1, %v747_v13 }
 0x26d   :  { %v843_v15 = vpop.permute.xlu2 %842  ;;  %1196 = vmatmul.msk.f32.vlgmr.msra.gmra.mxu1 %vm143_vm1, %v743_v14 }
 0x271   :  { %1178 = vmatmul.msk.f32.vlgmr.msra.gmra.mxu2 %vm143_vm1, %v1584_v19 }
 0x272   :  { %1200 = vmatpush.xpose.msk.msra.mxu2 %vm143_vm1, %v845_v10 }
 0x275   :  { %v745_v16 = vpop.permute.xlu2 %744 }
 0x276   :  { %1201 = vmatpush.xpose.msk.msra.mxu2 %vm143_vm1, %v843_v15  ;;  %1197 = vmatmul.msk.f32.gmra.mxu1 %vm143_vm1, %v745_v16 }
 0x279   :  { %1179 = vmatmul.msk.f32.gmra.mxu2 %vm143_vm1, %v428_v63 }
 0x27a   :  { %v370_v22 = vpop.xlane.xlu0 %369 }
 0x27b   :  { %v374_v23 = vsub.f32 %v1630_v45, %v370_v22 }
 0x27d   :  { %v376_v24 = vmul.f32 1.442695, %v374_v23  ;;  %v1253_v28 = vpop.permute.xlu2 %1252 }
 0x27e   :  { %v1254_v32 = vunpack.i.l.bf16 %v1253_v28  ;;  %v1255_v33 = vunpack.i.h.bf16 %v1253_v28 }
 0x27f   :  { %1283 = vpow2.f32 %v376_v24 }
 0x281   :  { %1190 = vmatmul.msk.f32.vlgmr.msrb.gmra.mxu2 %vm143_vm1, %v647_v3 }
 0x285   :  { %v1284_v31 = vpop.eup %1283  ;;  %v1258_v36 = vpop.permute.xlu2 %1257 }
 0x286   :  { %v1259_v39 = vunpack.i.l.bf16 %v1258_v36  ;;  %v1260_v40 = vunpack.i.h.bf16 %v1258_v36  ;;  %v380_v1 = vsel %vm175_vm2, %v1284_v31, 0.0 }
 0x287   :  { %v373_v25 = vpop.xlane.xlu1 %372 }
 0x288   :  { %v375_v19 = vsub.f32 %v1635_v47, %v373_v25 }
 0x289   :  { %1191 = vmatmul.msk.f32.gmra.mxu2 %vm143_vm1, %v649_v8 }
 0x28a   :  { %v378_v29 = vmul.f32 1.442695, %v375_v19 }
 0x28c   :  { %1285 = vpow2.f32 %v378_v29 }
 0x28d   :  { %v1243_v26 = vpop.permute.xlu0 %1242 }
 0x28e   :  { %v1244_v27 = vunpack.i.l.bf16 %v1243_v26  ;;  %v1245_v30 = vunpack.i.h.bf16 %v1243_v26 }
 0x290   :  { %412 = vmatpush.msra.mxu3 %v1244_v27 }
 0x291   :  { %1202 = vmatmul.msk.f32.vlgmr.msra.gmra.mxu2 %vm143_vm1, %v839_v17 }
 0x292   :  { %413 = vmatpush.msra.mxu3 %v1245_v30  ;;  %v1286_v34 = vpop.eup %1285 }
 0x293   :  { %1174 = vmatmul.msk.f32.vlgmr.msra.gmra.mxu3 %vm175_vm2, %v1284_v31  ;;  %v383_v9 = vsel %vm175_vm2, %v1286_v34, 0.0 }
 0x294   :  { %633 = vmatpush.msrb.mxu3 %v1254_v32 }
 0x296   :  { %634 = vmatpush.msrb.mxu3 %v1255_v33  ;;  %v188_v33 = vsel %vm175_vm2, %v1649_v56, 0.0  ;;  %v191_v56 = vsel %vm175_vm2, %v1658_v60, 0.0 }
 0x299   :  { %1203 = vmatmul.msk.f32.gmra.mxu2 %vm143_vm1, %v841_v18  ;;  %v284_v18 = vsel %vm175_vm2, %v1664_v62, 0.0 }
 0x29b   :  { %1175 = vmatmul.msk.f32.gmra.mxu3 %vm175_vm2, %v1286_v34 }
 0x29f   :  { %v1248_v35 = vpop.permute.xlu1 %1247 }
 0x2a0   :  { %v1249_v37 = vunpack.i.l.bf16 %v1248_v35  ;;  %v1250_v38 = vunpack.i.h.bf16 %v1248_v35 }
 0x2a2   :  { %508 = vmatpush.msrb.mxu0 %v1249_v37 }
 0x2a3   :  { %v1697_v45 = vpop.f32.mrf.mxu2 }
 0x2a4   :  { %509 = vmatpush.msrb.mxu0 %v1250_v38 }
 0x2a6   :  { %729 = vmatpush.msra.mxu0 %v1259_v39 }
 0x2a8   :  { %730 = vmatpush.msra.mxu0 %v1260_v40 }
 0x2ab   :  { %v1699_v46 = vpop.f32.mrf.mxu2 }
 0x2b3   :  { %v1701_v47 = vpop.f32.mrf.mxu2 }
 0x2b8   :  { %v583_v41 = vpop.f32.mrf.mxu1 }
 0x2b9   :  { %v589_v42 = vsel %vm175_vm2, %v583_v41, -inf }
 0x2ba   :  { %590 = vmax.xlane.f32.xlu2 %v589_v42 }
 0x2c0   :  { %v586_v43 = vpop.f32.mrf.mxu1 }
 0x2c1   :  { %v592_v44 = vsel %vm175_vm2, %v586_v43, -inf }
 0x2c2   :  { %593 = vmax.xlane.f32.xlu0 %v592_v44 }
 0x2ea   :  { %v775_v48 = vpop.f32.mrf.mxu1 }
 0x2eb   :  { %v781_v49 = vsel %vm175_vm2, %v775_v48, -inf }
 0x2ec   :  { %v1704_v50 = vpop.f32.mrf.mxu2  ;;  %782 = vmax.xlane.f32.xlu2 %v781_v49 }
 0x2f3   :  { %v778_v51 = vpop.f32.mrf.mxu1 }
 0x2f4   :  { %v458_v53 = vpop.f32.mrf.mxu2  ;;  %v784_v54 = vsel %vm175_vm2, %v778_v51, -inf }
 0x2f5   :  { %785 = vmax.xlane.f32.xlu0 %v784_v54  ;;  %v464_v55 = vsel %vm175_vm2, %v458_v53, -inf }
 0x2f6   :  { %465 = vmax.xlane.f32.xlu2 %v464_v55 }
 0x2fc   :  { %v461_v57 = vpop.f32.mrf.mxu2 }
 0x2fd   :  { %v467_v58 = vsel %vm175_vm2, %v461_v57, -inf }
 0x2fe   :  { %468 = vmax.xlane.f32.xlu2 %v467_v58 }
 0x304   :  { %v1709_v59 = vpop.f32.mrf.mxu2 }
 0x305   :  { %v685_v61 = vsel %vm175_vm2, %v1709_v59, -inf }
 0x306   :  { %686 = vmax.xlane.f32.xlu2 %v685_v61 }
 0x30c   :  { %v1713_v63 = vpop.f32.mrf.mxu2 }
 0x30d   :  { %v688_v0 = vsel %vm175_vm2, %v1713_v63, -inf }
 0x30e   :  { %689 = vmax.xlane.f32.xlu1 %v688_v0  ;;  %381 = vadd.xlane.f32.xlu2 %v380_v1 }
 0x314   :  { %v1718_v2 = vpop.f32.mrf.mxu2 }
 0x315   :  { %v877_v3 = vsel %vm175_vm2, %v1718_v2, -inf }
 0x316   :  { %878 = vmax.xlane.f32.xlu0 %v877_v3  ;;  %288 = vadd.xlane.f32.xlu2 %v287_v6  ;;  %v415_v54 = vpop.f32.mrf.mxu3 }
 0x31c   :  { %v1724_v7 = vpop.f32.mrf.mxu2 }
 0x31d   :  { %v880_v8 = vsel %vm175_vm2, %v1724_v7, -inf }
 0x31e   :  { %881 = vmax.xlane.f32.xlu0 %v880_v8  ;;  %384 = vadd.xlane.f32.xlu2 %v383_v9 }
 0x327   :  { %1262 = vrot.lane.b32.xlu1 %v1642_v52, %s1465_s25 }
 0x32d   :  { %v591_v10 = vpop.xlane.xlu2 %590 }
 0x32e   :  { %v595_v11 = vsub.f32 %v583_v41, %v591_v10 }
 0x330   :  { %v597_v13 = vmul.f32 1.442695, %v595_v11 }
 0x332   :  { %1287 = vpow2.f32 %v597_v13  ;;  %1267 = vrot.lane.b32.xlu0 %v1642_v52, %s1466_s26 }
 0x335   :  { %v594_v12 = vpop.xlane.xlu0 %593 }
 0x336   :  { %v596_v14 = vsub.f32 %v586_v43, %v594_v12 }
 0x338   :  { %v1733_v15 = vpop.eup %1287  ;;  %v599_v16 = vmul.f32 1.442695, %v596_v14 }
 0x339   :  { %1186 = vmatmul.msk.f32.vlgmr.msrb.gmra.mxu3 %vm175_vm2, %v1733_v15 }
 0x33a   :  { %1289 = vpow2.f32 %v599_v16 }
 0x340   :  { %v1737_v17 = vpop.eup %1289 }
 0x341   :  { %1187 = vmatmul.msk.f32.gmra.mxu3 %vm175_vm2, %v1737_v17 }
 0x351   :  { %285 = vadd.xlane.f32.xlu1 %v284_v18 }
 0x35f   :  { %v783_v22 = vpop.xlane.xlu2 %782 }
 0x360   :  { %v787_v52 = vsub.f32 %v775_v48, %v783_v22 }
 0x362   :  { %v789_v23 = vmul.f32 1.442695, %v787_v52 }
 0x364   :  { %1291 = vpow2.f32 %v789_v23 }
 0x368   :  { %v786_v24 = vpop.xlane.xlu0 %785 }
 0x369   :  { %v788_v25 = vsub.f32 %v778_v51, %v786_v24  ;;  %v466_v19 = vpop.xlane.xlu2 %465  ;;  %v418_v24 = vpop.f32.mrf.mxu3 }
 0x36a   :  { %v1292_v26 = vpop.eup %1291  ;;  %v470_v27 = vsub.f32 %v458_v53, %v466_v19 }
 0x36b   :  { %v791_v28 = vmul.f32 1.442695, %v788_v25  ;;  %v793_v29 = vsel %vm175_vm2, %v1292_v26, 0.0 }
 0x36c   :  { %v472_v30 = vmul.f32 1.442695, %v470_v27  ;;  %794 = vadd.xlane.f32.xlu1 %v793_v29 }
 0x36d   :  { %1293 = vpow2.f32 %v791_v28  ;;  %v601_v28 = vsel %vm175_vm2, %v1733_v15, 0.0 }
 0x36e   :  { %1295 = vpow2.f32 %v472_v30 }
 0x371   :  { %v469_v31 = vpop.xlane.xlu2 %468 }
 0x372   :  { %v471_v32 = vsub.f32 %v461_v57, %v469_v31 }
 0x373   :  { %v1294_v62 = vpop.eup %1293 }
 0x374   :  { %v1296_v34 = vpop.eup %1295  ;;  %v474_v35 = vmul.f32 1.442695, %v471_v32  ;;  %189 = vadd.xlane.f32.xlu1 %v188_v33  ;;  %v796_v36 = vsel %vm175_vm2, %v1294_v62, 0.0 }
 0x375   :  { %1180 = vmatmul.msk.f32.vlgmr.msrb.gmra.mxu0 %vm175_vm2, %v1296_v34  ;;  %797 = vadd.xlane.f32.xlu2 %v796_v36  ;;  %v476_v37 = vsel %vm175_vm2, %v1296_v34, 0.0 }
 0x376   :  { %1297 = vpow2.f32 %v474_v35  ;;  %477 = vadd.xlane.f32.xlu0 %v476_v37 }
 0x379   :  { %v687_v38 = vpop.xlane.xlu2 %686 }
 0x37a   :  { %v691_v39 = vsub.f32 %v1709_v59, %v687_v38 }
 0x37c   :  { %v1298_v40 = vpop.eup %1297  ;;  %v693_v41 = vmul.f32 1.442695, %v691_v39 }
 0x37d   :  { %1181 = vmatmul.msk.f32.gmra.mxu0 %vm175_vm2, %v1298_v40  ;;  %192 = vadd.xlane.f32.xlu2 %v191_v56 }
 0x37e   :  { %1299 = vpow2.f32 %v693_v41 }
 0x381   :  { %v690_v42 = vpop.xlane.xlu1 %689  ;;  %v382_v43 = vpop.xlane.xlu2 %381 }
 0x382   :  { %v692_v44 = vsub.f32 %v1713_v63, %v690_v42  ;;  %1301 = vrcp.f32 %v382_v43 }
 0x384   :  { %v1300_v48 = vpop.eup %1299  ;;  %v695_v49 = vmul.f32 1.442695, %v692_v44 }
 0x385   :  { %1192 = vmatmul.msk.f32.vlgmr.msra.gmra.mxu0 %vm175_vm2, %v1300_v48  ;;  %v697_v18 = vsel %vm175_vm2, %v1300_v48, 0.0 }
 0x386   :  { %1303 = vpow2.f32 %v695_v49 }
 0x388   :  { %v1302_v51 = vpop.eup %1301 }
 0x389   :  { %v289_v53 = vpop.xlane.xlu2 %288  ;;  %v423_v55 = vmul.f32 %v1302_v51, %v415_v54  ;;  %v879_v58 = vpop.xlane.xlu0 %878 }
 0x38a   :  { %1305 = vrcp.f32 %v289_v53  ;;  %v883_v0 = vsub.f32 %v1718_v2, %v879_v58 }
 0x38c   :  { %v1304_v60 = vpop.eup %1303  ;;  %v885_v6 = vmul.f32 1.442695, %v883_v0 }
 0x38d   :  { %1193 = vmatmul.msk.f32.gmra.mxu0 %vm175_vm2, %v1304_v60  ;;  %531 = vrot.lane.b32.xlu1 %v423_v55, %s1467_s27  ;;  %v700_v12 = vsel %vm175_vm2, %v1304_v60, 0.0 }
 0x38e   :  { %1307 = vpow2.f32 %v885_v6 }
 0x390   :  { %v1306_v57 = vpop.eup %1305 }
 0x391   :  { %v328_v59 = vmul.f32 %v1306_v57, %v1704_v50  ;;  %v882_v1 = vpop.xlane.xlu0 %881  ;;  %v385_v14 = vpop.xlane.xlu2 %384 }
 0x392   :  { %v884_v8 = vsub.f32 %v1724_v7, %v882_v1  ;;  %v479_v7 = vsel %vm175_vm2, %v1298_v40, 0.0 }
 0x394   :  { %v887_v11 = vmul.f32 1.442695, %v884_v8  ;;  %v1308_v13 = vpop.eup %1307 }
 0x395   :  { %525 = vrot.lane.b32.xlu2 %v328_v59, %s1453_s10  ;;  %v889_v42 = vsel %vm175_vm2, %v1308_v13, 0.0 }
 0x396   :  { %1309 = vpow2.f32 %v887_v11 }
 0x397   :  { %1311 = vrcp.f32 %v385_v14 }
 0x399   :  { %v1263_v61 = vpop.permute.xlu1 %1262 }
 0x39a   :  { %v1264_v63 = vunpack.i.l.bf16 %v1263_v61  ;;  %v1265_v3 = vunpack.i.h.bf16 %v1263_v61 }
 0x39c   :  { %825 = vmatpush.msra.mxu3 %v1264_v63  ;;  %v1310_v2 = vpop.eup %1309 }
 0x39d   :  { %v1312_v22 = vpop.eup %1311  ;;  %v892_v32 = vsel %vm175_vm2, %v1310_v2, 0.0 }
 0x39e   :  { %826 = vmatpush.msra.mxu3 %v1265_v3  ;;  %v424_v25 = vmul.f32 %v1312_v22, %v418_v24 }
 0x39f   :  { %1198 = vmatmul.msk.f32.vlgmr.msra.gmra.mxu3 %vm175_vm2, %v1292_v26 }
 0x3a4   :  { %v1268_v9 = vpop.permute.xlu0 %1267 }
 0x3a5   :  { %v1269_v10 = vunpack.i.l.bf16 %v1268_v9  ;;  %v1270_v50 = vunpack.i.h.bf16 %v1268_v9 }
 0x3a7   :  { %1199 = vmatmul.msk.f32.gmra.mxu3 %vm175_vm2, %v1294_v62  ;;  %921 = vmatpush.msrb.mxu0 %v1269_v10 }
 0x3a9   :  { %922 = vmatpush.msrb.mxu0 %v1270_v50 }
 0x3aa   :  { %1204 = vmatmul.msk.f32.vlgmr.msrb.gmra.mxu0 %vm175_vm2, %v1308_v13  ;;  %v82_v13 = vld [vmem:[#allocation7 + $0x18] sm:$0xff] }
 0x3ab   :  { %991 = vmatpush.msrb.mxu1 %v82_v13 }
 0x3b2   :  { %1205 = vmatmul.msk.f32.gmra.mxu0 %vm175_vm2, %v1310_v2  ;;  %v81_v2 = vld [vmem:[#allocation7 + $0x10] sm:$0xff] }
 0x3b3   :  { %992 = vmatpush.msrb.mxu1 %v81_v2 }
 0x3b7   :  { %701 = vadd.xlane.f32.xlu1 %v700_v12  ;;  %v80_v12 = vld [vmem:[#allocation7 + $0x8] sm:$0xff] }
 0x3b8   :  { %993 = vmatpush.msrb.mxu1 %v80_v12 }
 0x3bc   :  { %v1780_v62 = vpop.f32.mrf.mxu3 }
 0x3be   :  { %480 = vadd.xlane.f32.xlu2 %v479_v7  ;;  %v79_v7 = vld [vmem:[#allocation7] sm:$0xff] }
 0x3bf   :  { %994 = vmatpush.msrb.mxu1 %v79_v7 }
 0x3c4   :  { %v286_v16 = vpop.xlane.xlu1 %285  ;;  %v1782_v34 = vpop.f32.mrf.mxu3 }
 0x3c5   :  { %1313 = vrcp.f32 %v286_v16 }
 0x3c6   :  { %698 = vadd.xlane.f32.xlu2 %v697_v18 }
 0x3cb   :  { %v1314_v52 = vpop.eup %1313 }
 0x3cc   :  { %v327_v23 = vmul.f32 %v1314_v52, %v1701_v47  ;;  %v604_v47 = vsel %vm175_vm2, %v1737_v17, 0.0 }
 0x3ce   :  { %523 = vrot.lane.b32.xlu0 %v327_v23, %s1453_s10 }
 0x3d0   :  { %533 = vrot.lane.b32.xlu1 %v424_v25, %s1467_s27 }
 0x3df   :  { %v795_v33 = vpop.xlane.xlu1 %794 }
 0x3e7   :  { %v190_v36 = vpop.xlane.xlu1 %189 }
 0x3e8   :  { %v798_v19 = vpop.xlane.xlu2 %797 }
 0x3e9   :  { %v478_v17 = vpop.xlane.xlu0 %477 }
 0x3f0   :  { %v193_v26 = vpop.xlane.xlu2 %192 }
 0x3f1   :  { %1315 = vrcp.f32 %v193_v26 }
 0x3f2   :  { %1317 = vrcp.f32 %v795_v33  ;;  %v511_v43 = vpop.f32.mrf.mxu0 }
 0x3f3   :  { %1319 = vrcp.f32 %v190_v36 }
 0x3f4   :  { %1321 = vrcp.f32 %v478_v17 }
 0x3f7   :  { %v1316_v27 = vpop.eup %1315 }
 0x3f8   :  { %602 = vadd.xlane.f32.xlu0 %v601_v28  ;;  %v232_v29 = vmul.f32 %v1316_v27, %v1699_v46  ;;  %v526_v30 = vpop.permute.xlu2 %525  ;;  %v1318_v15 = vpop.eup %1317 }
 0x3f9   :  { %v1320_v37 = vpop.eup %1319 }
 0x3fa   :  { %v1777_v31 = vsel %vm143_vm1, %v232_v29, %v526_v30  ;;  %605 = vadd.xlane.f32.xlu1 %v604_v47  ;;  %v231_v38 = vmul.f32 %v1320_v37, %v1697_v45  ;;  %v1322_v48 = vpop.eup %1321  ;;  %v514_v51 = vpop.f32.mrf.mxu0 }
 0x3fb   :  { %v519_v49 = vmul.f32 %v1322_v48, %v511_v43 }
 0x3ff   :  { %v532_v40 = vpop.permute.xlu1 %531 }
 0x400   :  { %893 = vadd.xlane.f32.xlu0 %v892_v32 }
 0x402   :  { %v732_v55 = vpop.f32.mrf.mxu0 }
 0x40a   :  { %v735_v63 = vpop.f32.mrf.mxu0 }
 0x422   :  { %v828_v35 = vpop.f32.mrf.mxu3 }
 0x423   :  { %v836_v46 = vmul.f32 %v1318_v15, %v828_v35 }
 0x425   :  { %944 = vrot.lane.b32.xlu2 %v836_v46, %s1467_s27 }
 0x427   :  { %v924_v3 = vpop.f32.mrf.mxu0 }
 0x42a   :  { %v702_v60 = vpop.xlane.xlu1 %701  ;;  %v831_v6 = vpop.f32.mrf.mxu3 }
 0x42f   :  { %v927_v11 = vpop.f32.mrf.mxu0 }
 0x431   :  { %v481_v44 = vpop.xlane.xlu2 %480 }
 0x432   :  { %1323 = vrcp.f32 %v481_v44 }
 0x438   :  { %v1324_v53 = vpop.eup %1323 }
 0x439   :  { %v699_v45 = vpop.xlane.xlu2 %698  ;;  %v520_v54 = vmul.f32 %v1324_v53, %v514_v51 }
 0x43a   :  { %1325 = vrcp.f32 %v699_v45 }
 0x43b   :  { %1327 = vrcp.f32 %v702_v60 }
 0x43c   :  { %1329 = vrcp.f32 %v798_v19 }
 0x440   :  { %v524_v39 = vpop.permute.xlu0 %523  ;;  %v1326_v57 = vpop.eup %1325 }
 0x441   :  { %v545_v41 = vsel %vm143_vm1, %v231_v38, %v524_v39  ;;  %v740_v58 = vmul.f32 %v1326_v57, %v732_v55  ;;  %v1328_v61 = vpop.eup %1327  ;;  %v1272_v38 = vld [vmem:[%s1855_s4] ss:$0 sm:$0xff]  ;;  %v1469_v57 = vmov 32.0  }
 0x442   :  { %v547_v56 = vsel %vm175_vm2, %v545_v41, %v532_v40  ;;  %v741_v0 = vmul.f32 %v1328_v61, %v735_v63  ;;  %v1330_v8 = vpop.eup %1329  ;;  %v534_v24 = vpop.permute.xlu1 %533 }
 0x443   :  { %v837_v9 = vmul.f32 %v1330_v8, %v831_v6  ;;  %v548_v25 = vsel %vm175_vm2, %v1777_v31, %v534_v24 }
 0x44e   :  { %890 = vadd.xlane.f32.xlu2 %v889_v42 }
 0x466   :  { %539 = vrot.lane.b32.xlu2 %v519_v49, %s1468_s28 }
 0x46b   :  { %v603_v59 = vpop.xlane.xlu0 %602 }
 0x46d   :  { %v606_v33 = vpop.xlane.xlu1 %605 }
 0x46e   :  { %541 = vrot.lane.b32.xlu2 %v520_v54, %s1468_s28 }
 0x473   :  { %v894_v1 = vpop.xlane.xlu0 %893 }
 0x474   :  { %1331 = vrcp.f32 %v894_v1 }
 0x476   :  { %936 = vrot.lane.b32.xlu2 %v740_v58, %s1453_s10 }
 0x47a   :  { %v1332_v10 = vpop.eup %1331 }
 0x47b   :  { %v933_v50 = vmul.f32 %v1332_v10, %v927_v11 }
 0x47e   :  { %938 = vrot.lane.b32.xlu2 %v741_v0, %s1453_s10 }
 0x47f   :  { %v945_v14 = vpop.permute.xlu2 %944 }
 0x486   :  { %946 = vrot.lane.b32.xlu2 %v837_v9, %s1467_s27 }
 0x48e   :  { %954 = vrot.lane.b32.xlu2 %v933_v50, %s1468_s28 }
 0x4c1   :  { %v891_v16 = vpop.xlane.xlu2 %890 }
 0x4c2   :  { %1333 = vrcp.f32 %v891_v16 }
 0x4c3   :  { %1335 = vrcp.f32 %v603_v59 }
 0x4c4   :  { %1337 = vrcp.f32 %v606_v33 }
 0x4c5   :  { %1339 = vrcp.f32 %v1469_v57 }
 0x4c8   :  { %v1334_v18 = vpop.eup %1333 }
 0x4c9   :  { %v540_v22 = vpop.permute.xlu2 %539  ;;  %v932_v52 = vmul.f32 %v1334_v18, %v924_v3  ;;  %v1336_v27 = vpop.eup %1335 }
 0x4ca   :  { %v550_v23 = vsel %vm549_vm3, %v547_v56, %v540_v22  ;;  %v644_v28 = vmul.f32 %v1336_v27, %v1780_v62  ;;  %v1338_v46 = vpop.eup %1337 }
 0x4cb   :  { %952 = vrot.lane.b32.xlu0 %v932_v52, %s1468_s28  ;;  %1206 = vmatmul.msk.f32.vlgmr.msrb.gmra.mxu1 %vm99_vm0, %v550_v23  ;;  %v645_v36 = vmul.f32 %v1338_v46, %v1782_v34  ;;  %v1340_v58 = vpop.eup %1339 }
 0x4cc   :  { %vm1029_vm4 = vweird.f32 %v1340_v58 }
 0x4d1   :  { %v542_v19 = vpop.permute.xlu2 %541 }
 0x4d2   :  { %v551_v26 = vsel %vm549_vm3, %v548_v25, %v542_v19 }
 0x4d3   :  { %1207 = vmatmul.msk.f32.gmra.mxu1 %vm99_vm0, %v551_v26 }
 0x4d9   :  { %v937_v29 = vpop.permute.xlu2 %936 }
 0x4da   :  { %v958_v30 = vsel %vm143_vm1, %v644_v28, %v937_v29 }
 0x4db   :  { %v960_v47 = vsel %vm175_vm2, %v958_v30, %v945_v14 }
 0x4e1   :  { %v939_v32 = vpop.permute.xlu2 %938 }
 0x4e2   :  { %v959_v62 = vsel %vm143_vm1, %v645_v36, %v939_v32 }
 0x4e9   :  { %v947_v15 = vpop.permute.xlu2 %946 }
 0x4ea   :  { %v961_v37 = vsel %vm175_vm2, %v959_v62, %v947_v15  ;;  %v1273_v62 = vld [vmem:[%s1856_s5] ss:$0 sm:$0xff]  ;;  %s1470_s5 = smov 32   ;;  %vm1131_vm2 = vcmask 523264  }
 0x4f1   :  { %v955_v17 = vpop.permute.xlu2 %954 }
 0x4f2   :  { %v963_v39 = vsel %vm549_vm3, %v961_v37, %v955_v17 }
 0x53d   :  { %v953_v35 = vpop.permute.xlu0 %952 }
 0x53e   :  { %v962_v31 = vsel %vm549_vm3, %v960_v47, %v953_v35 }
 0x53f   :  { %1208 = vmatmul.msk.f32.gmra.mxu1 %vm99_vm0, %v962_v31 }
 0x547   :  { %1209 = vmatmul.msk.f32.gmra.mxu1 %vm99_vm0, %v963_v39 }
 0x548   :  { %v996_v40 = vpop.f32.mrf.mxu1 }
 0x549   :  { %v997_v41 = vadd.f32 %v1272_v38, %v996_v40  ;;  %v1274_v40 = vld [vmem:[%s1857_s6] ss:$0 sm:$0xff]  ;;  %s1471_s6 = smov [#allocation8]  }
 0x54a   :  { %s1138_s13 = sshll.u32 %s1471_s6, 4  ;;  %s1139_s13 = int_to_ptr.vmem [resolvable:$true] %s1138_s13 }
 0x54b   :  { %v1008_v56 = vadd.f32 %v997_v41, %v1530_v4 }
 0x54d   :  { %v1012_v42 = vsel %vm99_vm0, %v1008_v56, 0.0 }
 0x54e   :  { %1013 = vadd.xlane.f32.xlu2 %v1012_v42 }
 0x550   :  { %v999_v34 = vpop.f32.mrf.mxu1 }
 0x551   :  { %v1000_v54 = vadd.f32 %v1272_v38, %v999_v34 }
 0x553   :  { %v1009_v4 = vadd.f32 %v1000_v54, %v1534_v5 }
 0x555   :  { %v1015_v60 = vsel %vm99_vm0, %v1009_v4, 0.0 }
 0x5bc   :  { %v1002_v43 = vpop.f32.mrf.mxu1 }
 0x5bd   :  { %v1003_v44 = vadd.f32 %v1272_v38, %v1002_v43 }
 0x5bf   :  { %v1010_v48 = vadd.f32 %v1003_v44, %v1588_v21  ;;  %v1025_v21 = vmul.f32 32.0, %v1340_v58 }
 0x5c1   :  { %v1018_v49 = vsel %vm99_vm0, %v1010_v48, 0.0  ;;  %v1026_v59 = vsub.f32 1.0, %v1025_v21  ;;  %v1014_v9 = vpop.xlane.xlu2 %1013 }
 0x5c2   :  { %1019 = vadd.xlane.f32.xlu0 %v1018_v49 }
 0x5c3   :  { %v1027_v61 = vmul.f32 %v1340_v58, %v1026_v59 }
 0x5c4   :  { %v1005_v51 = vpop.f32.mrf.mxu1 }
 0x5c5   :  { %v1006_v45 = vadd.f32 %v1272_v38, %v1005_v51  ;;  %v1028_v63 = vadd.f32 %v1340_v58, %v1027_v61 }
 0x5c7   :  { %v1011_v53 = vadd.f32 %v1006_v45, %v1586_v20  ;;  %v1030_v0 = vsel %vm1029_vm4, %v1340_v58, %v1028_v63 }
 0x5c8   :  { %v1031_v11 = vmul.f32 %v1030_v0, %v1014_v9 }
 0x5c9   :  { %v1021_v55 = vsel %vm99_vm0, %v1011_v53, 0.0 }
 0x5ca   :  { %1022 = vadd.xlane.f32.xlu1 %v1021_v55  ;;  %v1824_v2 = vsub.f32 %v1008_v56, %v1031_v11 }
 0x5cc   :  { %v1039_v16 = vmul.f32 %v1824_v2, %v1824_v2 }
 0x5ce   :  { %v1043_v22 = vsel %vm99_vm0, %v1039_v16, 0.0 }
 0x5d2   :  { %1016 = vadd.xlane.f32.xlu1 %v1015_v60 }
 0x635   :  { %v1020_v1 = vpop.xlane.xlu0 %1019 }
 0x636   :  { %v1033_v20 = vmul.f32 %v1030_v0, %v1020_v1 }
 0x638   :  { %v1037_v3 = vsub.f32 %v1010_v48, %v1033_v20 }
 0x63a   :  { %v1041_v6 = vmul.f32 %v1037_v3, %v1037_v3 }
 0x63c   :  { %v1049_v8 = vsel %vm99_vm0, %v1041_v6, 0.0 }
 0x63d   :  { %1050 = vadd.xlane.f32.xlu1 %v1049_v8  ;;  %v1023_v5 = vpop.xlane.xlu1 %1022 }
 0x63e   :  { %v1034_v10 = vmul.f32 %v1030_v0, %v1023_v5 }
 0x640   :  { %v1038_v50 = vsub.f32 %v1011_v53, %v1034_v10 }
 0x642   :  { %v1042_v13 = vmul.f32 %v1038_v50, %v1038_v50 }
 0x644   :  { %v1052_v12 = vsel %vm99_vm0, %v1042_v13, 0.0 }
 0x645   :  { %1053 = vadd.xlane.f32.xlu1 %v1052_v12  ;;  %v1017_v7 = vpop.xlane.xlu1 %1016 }
 0x646   :  { %v1032_v14 = vmul.f32 %v1030_v0, %v1017_v7 }
 0x648   :  { %v1829_v18 = vsub.f32 %v1009_v4, %v1032_v14 }
 0x64a   :  { %v1040_v52 = vmul.f32 %v1829_v18, %v1829_v18 }
 0x64c   :  { %v1046_v23 = vsel %vm99_vm0, %v1040_v52, 0.0 }
 0x64d   :  { %1044 = vadd.xlane.f32.xlu1 %v1043_v22 }
 0x655   :  { %1047 = vadd.xlane.f32.xlu1 %v1046_v23 }
 0x6b0   :  { %v1051_v24 = vpop.xlane.xlu1 %1050 }
 0x6b1   :  { %v1057_v25 = vmul.f32 %v1051_v24, %v1030_v0 }
 0x6b3   :  { %v1061_v19 = vadd.f32 1e-05, %v1057_v25 }
 0x6b5   :  { %1341 = vrsqrt.f32 %v1061_v19  ;;  %vm1089_vm6 = vweird.f32 %v1061_v19 }
 0x6b8   :  { %v1054_v26 = vpop.xlane.xlu1 %1053 }
 0x6b9   :  { %v1058_v27 = vmul.f32 %v1054_v26, %v1030_v0 }
 0x6bb   :  { %v1342_v28 = vpop.eup %1341  ;;  %v1062_v29 = vadd.f32 1e-05, %v1058_v27 }
 0x6bc   :  { %v1084_v30 = vmul.f32 %v1342_v28, %v1061_v19  ;;  %vm1090_vm5 = vweird.f32 %v1342_v28 }
 0x6bd   :  { %1343 = vrsqrt.f32 %v1062_v29  ;;  %vm1091_vm7 = vmor %vm1089_vm6, %vm1090_vm5  ;;  %vm1099_vm9 = vweird.f32 %v1062_v29 }
 0x6be   :  { %v1085_v47 = vmul.f32 %v1342_v28, %v1084_v30 }
 0x6c0   :  { %v1086_v32 = vmul.f32 0.5, %v1085_v47  ;;  %v1045_v33 = vpop.xlane.xlu1 %1044 }
 0x6c1   :  { %v1055_v15 = vmul.f32 %v1045_v33, %v1030_v0 }
 0x6c2   :  { %v1087_v35 = vsub.f32 1.5, %v1086_v32 }
 0x6c3   :  { %v1344_v31 = vpop.eup %1343  ;;  %v1059_v46 = vadd.f32 1e-05, %v1055_v15 }
 0x6c4   :  { %v1088_v36 = vmul.f32 %v1342_v28, %v1087_v35  ;;  %v1094_v17 = vmul.f32 %v1344_v31, %v1062_v29  ;;  %vm1100_vm8 = vweird.f32 %v1344_v31 }
 0x6c5   :  { %1345 = vrsqrt.f32 %v1059_v46  ;;  %vm1101_vm10 = vmor %vm1099_vm9, %vm1100_vm8  ;;  %vm1069_vm12 = vweird.f32 %v1059_v46 }
 0x6c6   :  { %v1092_v37 = vsel %vm1091_vm7, %v1342_v28, %v1088_v36  ;;  %v1095_v38 = vmul.f32 %v1344_v31, %v1094_v17 }
 0x6c7   :  { %v1105_v39 = vmul.f32 %v1092_v37, %v1037_v3 }
 0x6c8   :  { %v1096_v41 = vmul.f32 0.5, %v1095_v38  ;;  %v1048_v56 = vpop.xlane.xlu1 %1047 }
 0x6c9   :  { %v1056_v42 = vmul.f32 %v1048_v56, %v1030_v0  ;;  %v1112_v34 = vmul.f32 %v1273_v62, %v1105_v39 }
 0x6ca   :  { %v1097_v43 = vsub.f32 1.5, %v1096_v41 }
 0x6cb   :  { %v1346_v44 = vpop.eup %1345  ;;  %v1060_v48 = vadd.f32 1e-05, %v1056_v42  ;;  %v1119_v49 = vadd.f32 %v1274_v40, %v1112_v34 }
 0x6cc   :  { %v1098_v51 = vmul.f32 %v1344_v31, %v1097_v43  ;;  %v1064_v45 = vmul.f32 %v1346_v44, %v1059_v46  ;;  %vm1070_vm11 = vweird.f32 %v1346_v44 }
 0x6cd   :  { %1347 = vrsqrt.f32 %v1060_v48  ;;  %1123 = vrot.lane.b32.xlu0 %v1119_v49, %s1470_s5  ;;  %vm1071_vm13 = vmor %vm1069_vm12, %vm1070_vm11  ;;  %vm1079_vm15 = vweird.f32 %v1060_v48 }
 0x6ce   :  { %v1102_v53 = vsel %vm1101_vm10, %v1344_v31, %v1098_v51  ;;  %v1065_v54 = vmul.f32 %v1346_v44, %v1064_v45 }
 0x6cf   :  { %v1106_v55 = vmul.f32 %v1102_v53, %v1038_v50 }
 0x6d0   :  { %v1066_v4 = vmul.f32 0.5, %v1065_v54 }
 0x6d1   :  { %v1113_v60 = vmul.f32 %v1273_v62, %v1106_v55 }
 0x6d2   :  { %v1067_v57 = vsub.f32 1.5, %v1066_v4 }
 0x6d3   :  { %v1348_v58 = vpop.eup %1347  ;;  %v1120_v21 = vadd.f32 %v1274_v40, %v1113_v60 }
 0x6d4   :  { %v1068_v59 = vmul.f32 %v1346_v44, %v1067_v57  ;;  %v1074_v61 = vmul.f32 %v1348_v58, %v1060_v48  ;;  %vm1080_vm14 = vweird.f32 %v1348_v58 }
 0x6d5   :  { %1125 = vrot.lane.b32.xlu2 %v1120_v21, %s1470_s5  ;;  %vm1081_vm1 = vmor %vm1079_vm15, %vm1080_vm14 }
 0x6d6   :  { %v1072_v63 = vsel %vm1071_vm13, %v1346_v44, %v1068_v59  ;;  %v1075_v0 = vmul.f32 %v1348_v58, %v1074_v61 }
 0x6d7   :  { %v1103_v1 = vmul.f32 %v1072_v63, %v1824_v2 }
 0x6d8   :  { %v1076_v20 = vmul.f32 0.5, %v1075_v0 }
 0x6d9   :  { %v1110_v3 = vmul.f32 %v1273_v62, %v1103_v1 }
 0x6da   :  { %v1077_v6 = vsub.f32 1.5, %v1076_v20 }
 0x6db   :  { %v1117_v8 = vadd.f32 %v1274_v40, %v1110_v3 }
 0x6dc   :  { %v1078_v9 = vmul.f32 %v1348_v58, %v1077_v6 }
 0x6de   :  { %v1082_v5 = vsel %vm1081_vm1, %v1348_v58, %v1078_v9 }
 0x6df   :  { %v1104_v10 = vmul.f32 %v1082_v5, %v1829_v18 }
 0x6e1   :  { %v1111_v11 = vmul.f32 %v1273_v62, %v1104_v10 }
 0x6e3   :  { %v1118_v50 = vadd.f32 %v1274_v40, %v1111_v11 }
 0x72f   :  { %v1126_v13 = vpop.permute.xlu2 %1125 }
 0x730   :  { %v1130_v12 = vsel %vm99_vm0, %v1118_v50, %v1126_v13 }
 0x731   :  { %1133 = vst.msk [vmem:[#allocation8 + $0x8] sm:$0xff] %vm1131_vm2, %v1130_v12 }
 0x73f   :  { %v1124_v2 = vpop.permute.xlu0 %1123 }
 0x740   :  { %v1129_v7 = vsel %vm99_vm0, %v1117_v8, %v1124_v2 }
 0x741   :  { %1132 = vst.msk [vmem:[#allocation8] sm:$0xff] %vm1131_vm2, %v1129_v7 }
 0x742   :  { %1146 = dma.vmem_to_hbm [thread:$0]  %s1139_s13, 256, %s1141_s0, [#allocation4], %s1452_s9, %s1452_s9, %s1453_s10  }
 0x743   :  { %1449 = dma.done.wait [#allocation4], 256  }
 0x744   :  { %1450 = vsyncadd [#allocation4], 4294967040 }
 0x745   :  { %1151 = vsyncpa [#allocation3], 1 }
 0x746   :  { %1152 = vsyncpa [#allocation6], 1 }
 0x747   :  { %1153 = vsyncpa [#allocation4], 1 }

</bundles_post_ra>
